<compile_context>
chip_gen: v7x
topology: tpu7x:2x2x1
jax: 0.10.0
libtpu: 0.0.40
codegen_flags: <defaults>
</compile_context>

<pallas_src>
import jax
import jax.numpy as jnp
import numpy as np
from jax.experimental import pallas as pl
from jax.experimental.pallas import tpu as pltpu

NEG_SLOPE = 0.01  # PyTorch nn.LeakyReLU default negative_slope


def _lrelu(v):
    return jnp.where(v > 0, v, NEG_SLOPE * v)


def lstm_mlp_kernel(mx_ref,                      # SMEM (1,) int32: max valid len
                    tok_ref, len_ref,            # (T*B, 1) int32 time-major, (B, 1)
                    tg_ref,                      # (VOCAB, 4H) token->gate table
                    whh_ref,                     # (H, 4H)
                    w1_ref, b1_ref, w2_ref, b2_ref, w3_ref, b3_ref,
                    out_ref,                     # (B, C)
                    h_scr, c_scr, last_scr):     # (B, H) each
    TB = len_ref.shape[0]
    TT = tok_ref.shape[0]          # T * TB
    T = TT // TB
    VOCAB = tg_ref.shape[0]
    H = whh_ref.shape[0]

    # ---------- hoisted, non-recurrent work (once) ----------
    h_scr[...] = jnp.zeros_like(h_scr)
    c_scr[...] = jnp.zeros_like(c_scr)
    last_scr[...] = jnp.zeros_like(last_scr)

    last_t = len_ref[...] - 1                    # (B, 1), hoisted out of loop
    max_len = mx_ref[0]                          # scalar loop bound

    # Exact embedding + input-projection gather as a one-hot matmul against the
    # precomputed (VOCAB, 4H) table.  Rows are TIME-MAJOR, so pre[t] below is a
    # free contiguous (TB, 4H) view inside the recurrence.
    oh = (tok_ref[...] ==
          jax.lax.broadcasted_iota(jnp.int32, (TT, VOCAB), 1)).astype(jnp.float32)
    pre = jnp.dot(oh, tg_ref[...], preferred_element_type=jnp.float32)  # (T*TB, 4H)
    pre = pre.reshape(T, TB, 4 * H)

    whh = whh_ref[...]                           # hoist weight load out of loop

    # ---------- recurrence: fully unrolled, length-bounded ----------
    for t in range(T):                           # static full unroll (T small)
        @pl.when(t < max_len)                    # skip fully-padded timesteps
        def _step(t=t):
            gates = pre[t] + jnp.dot(h_scr[...], whh,
                                     preferred_element_type=jnp.float32)
            # gate order [i | f | o | g] -> two wide EUP calls.
            # TODO(synk): if a bundle dump shows per-step lane rotates here,
            # realign the 32-lane gate slices with explicit pltpu.roll.
            ifo = jax.nn.sigmoid(gates[:, :3 * H])
            g_g = jnp.tanh(gates[:, 3 * H:])
            c_new = ifo[:, H:2 * H] * c_scr[...] + ifo[:, :H] * g_g
            h_new = ifo[:, 2 * H:] * jnp.tanh(c_new)
            c_scr[...] = c_new
            h_scr[...] = h_new
            # emulate h.gather(1, x_size - 1): latch h at t == x_size - 1.
            last_scr[...] = jnp.where(last_t == t, h_new, last_scr[...])

    # ---------- MLP head (dropouts are identity in eval) ----------
    a = _lrelu(last_scr[...])
    a = _lrelu(jnp.dot(a, w1_ref[...], preferred_element_type=jnp.float32)
               + b1_ref[...])
    a = _lrelu(jnp.dot(a, w2_ref[...], preferred_element_type=jnp.float32)
               + b2_ref[...])
    # NOTE: C == 1 -> masked 1-lane store; negligible at this size.
    out_ref[...] = (jnp.dot(a, w3_ref[...], preferred_element_type=jnp.float32)
                    + b3_ref[...]).astype(out_ref.dtype)


def prediction_model_forward(x_tokens, x_size, params):
    """x_tokens: (B, T) int token ids; x_size: (B, 1) (or (B,)) valid lengths."""
    B, T = x_tokens.shape
    VOCAB, E = params["embedding"].shape
    H = params["w_hh"].shape[0]
    C = params["w3"].shape[1]
    TB = B  # whole batch in one grid step (see review notes at top of file)

    # Grid-invariant table, hoisted out of the kernel: token -> input-gate
    # contribution, with the combined LSTM bias folded in.
    tok_gates = (jnp.dot(params["embedding"], params["w_ih"],
                         precision=jax.lax.Precision.HIGHEST)
                 + params["b_lstm"]).astype(jnp.float32)           # (VOCAB, 4H)

    # PyTorch indexing would raise on out-of-range ids; clamp so the in-kernel
    # one-hot gather stays an exact row select.
    toks = jnp.clip(x_tokens.astype(jnp.int32), 0, VOCAB - 1)
    tokens_tm = toks.T.reshape(T * B, 1)                           # time-major rows
    x_size = jnp.asarray(x_size, jnp.int32).reshape(B, 1)          # (B, 1)
    max_len = jnp.max(x_size).reshape(1).astype(jnp.int32)         # SMEM loop bound

    grid_spec = pltpu.PrefetchScalarGridSpec(
        num_scalar_prefetch=1,
        grid=(1,),
        in_specs=[
            pl.BlockSpec((T * TB, 1), lambda i, mx: (0, 0)),       # tokens (time-major)
            pl.BlockSpec((TB, 1), lambda i, mx: (0, 0)),           # lengths
            pl.BlockSpec((VOCAB, 4 * H), lambda i, mx: (0, 0)),    # tok_gates table
            pl.BlockSpec((H, 4 * H), lambda i, mx: (0, 0)),        # w_hh
            pl.BlockSpec((H, 3 * H), lambda i, mx: (0, 0)),        # w1
            pl.BlockSpec((1, 3 * H), lambda i, mx: (0, 0)),        # b1
            pl.BlockSpec((3 * H, H), lambda i, mx: (0, 0)),        # w2
            pl.BlockSpec((1, H), lambda i, mx: (0, 0)),            # b2
            pl.BlockSpec((H, C), lambda i, mx: (0, 0)),            # w3
            pl.BlockSpec((1, C), lambda i, mx: (0, 0)),            # b3
        ],
        out_specs=pl.BlockSpec((TB, C), lambda i, mx: (0, 0)),
        scratch_shapes=[
            pltpu.VMEM((TB, H), jnp.float32),   # h_t
            pltpu.VMEM((TB, H), jnp.float32),   # c_t
            pltpu.VMEM((TB, H), jnp.float32),   # last valid hidden
        ],
    )

    out = pl.pallas_call(
        lstm_mlp_kernel,
        out_shape=jax.ShapeDtypeStruct((B, C), jnp.float32),
        grid_spec=grid_spec,
        compiler_params=pltpu.CompilerParams(
            dimension_semantics=("arbitrary",)),
    )(max_len, tokens_tm, x_size,
      tok_gates, params["w_hh"],
      params["w1"], params["b1"], params["w2"], params["b2"],
      params["w3"], params["b3"])

    # PyTorch: .squeeze(1) — only collapses when prediction_classes == 1.
    return out[:, 0] if C == 1 else out


def reference_forward(x_tokens, x_size, params):
    """Pure-JAX reference with the same parameter layout (gate order [i,f,o,g])."""
    hp = jax.lax.Precision.HIGHEST
    emb = params["embedding"][x_tokens]                       # (B, T, E)
    B, T, _ = emb.shape
    H = params["w_hh"].shape[0]
    C = params["w3"].shape[1]
    h = jnp.zeros((B, H), jnp.float32)
    c = jnp.zeros((B, H), jnp.float32)
    last = jnp.zeros((B, H), jnp.float32)
    last_idx = jnp.asarray(x_size, jnp.int32).reshape(B, 1) - 1
    for t in range(T):
        gates = (jnp.dot(emb[:, t, :], params["w_ih"], precision=hp)
                 + jnp.dot(h, params["w_hh"], precision=hp) + params["b_lstm"])
        ifo = jax.nn.sigmoid(gates[:, :3 * H])
        g = jnp.tanh(gates[:, 3 * H:])
        c = ifo[:, H:2 * H] * c + ifo[:, :H] * g
        h = ifo[:, 2 * H:] * jnp.tanh(c)
        last = jnp.where(last_idx == t, h, last)
    a = _lrelu(last)
    a = _lrelu(jnp.dot(a, params["w1"], precision=hp) + params["b1"])
    a = _lrelu(jnp.dot(a, params["w2"], precision=hp) + params["b2"])
    out = jnp.dot(a, params["w3"], precision=hp) + params["b3"]
    return out[:, 0] if C == 1 else out


if __name__ == "__main__":
    # HyperParams (small, consistent with the module):
    #   embedding_dict_size=16, embedding_vector_size=one_hot_size=32,
    #   lstm_hidden_size=32, lstm_layers=1, is_bidirectional=False,
    #   prediction_classes=1, dropout=0.0 (eval).
    B, T = 16, 8
    VOCAB, E, H, C = 16, 32, 32, 1

    key = jax.random.PRNGKey(0)
    ks = jax.random.split(key, 12)
    sc = 0.1
    params = {
        "embedding": jax.random.normal(ks[0], (VOCAB, E), jnp.float32),
        # LSTM weights pre-transposed to (in, 4H); gate columns ordered
        # [i, f, o, g]; bias = b_ih + b_hh combined.
        "w_ih": sc * jax.random.normal(ks[1], (E, 4 * H), jnp.float32),
        "w_hh": sc * jax.random.normal(ks[2], (H, 4 * H), jnp.float32),
        "b_lstm": sc * jax.random.normal(ks[3], (1, 4 * H), jnp.float32),
        # MLP head, pre-transposed to (in, out).
        "w1": sc * jax.random.normal(ks[4], (H, 3 * H), jnp.float32),
        "b1": sc * jax.random.normal(ks[5], (1, 3 * H), jnp.float32),
        "w2": sc * jax.random.normal(ks[6], (3 * H, H), jnp.float32),
        "b2": sc * jax.random.normal(ks[7], (1, H), jnp.float32),
        "w3": sc * jax.random.normal(ks[8], (H, C), jnp.float32),
        "b3": sc * jax.random.normal(ks[9], (1, C), jnp.float32),
    }

    x_tokens = jax.random.randint(ks[10], (B, T), 0, VOCAB, dtype=jnp.int32)
    x_size = jax.random.randint(ks[11], (B, 1), 1, T + 1, dtype=jnp.int32)

    out = prediction_model_forward(x_tokens, x_size, params)
    jax.block_until_ready(out)

    assert out.shape == (B,), out.shape
    out_np = np.asarray(out)
    assert np.all(np.isfinite(out_np))

    ref = np.asarray(reference_forward(x_tokens, x_size, params))
    np.testing.assert_allclose(out_np, ref, rtol=5e-3, atol=5e-3)

    print("KERNEL_OK")
</pallas_src>

<mosaic_0001>
module attributes {stable_mosaic.version = 11 : i64} {
  func.func @lstm_mlp_kernel(%arg0: i32, %arg1: memref<1xi32, #tpu.memory_space<smem>>, %arg2: memref<128x1xi32, #tpu.memory_space<vmem>>, %arg3: memref<16x1xi32, #tpu.memory_space<vmem>>, %arg4: memref<16x128xf32, #tpu.memory_space<vmem>>, %arg5: memref<32x128xf32, #tpu.memory_space<vmem>>, %arg6: memref<32x96xf32, #tpu.memory_space<vmem>>, %arg7: memref<1x96xf32, #tpu.memory_space<vmem>>, %arg8: memref<96x32xf32, #tpu.memory_space<vmem>>, %arg9: memref<1x32xf32, #tpu.memory_space<vmem>>, %arg10: memref<32x1xf32, #tpu.memory_space<vmem>>, %arg11: memref<1x1xf32, #tpu.memory_space<vmem>>, %arg12: memref<16x1xf32, #tpu.memory_space<vmem>>, %arg13: memref<16x32xf32, #tpu.memory_space<vmem>>, %arg14: memref<16x32xf32, #tpu.memory_space<vmem>>, %arg15: memref<16x32xf32, #tpu.memory_space<vmem>>) attributes {dimension_semantics = [#tpu.dimension_semantics<arbitrary>], iteration_bounds = array<i64: 1>, scalar_prefetch = 1 : i64, scratch_operands = 3 : i64, tpu.core_type = #tpu.core_type<tc>, window_params = [{pipeline_mode = #tpu.pipeline_mode<synchronous>, transform_indices = @transform_0, window_bounds = array<i64: 128, 1>}, {pipeline_mode = #tpu.pipeline_mode<synchronous>, transform_indices = @transform_1, window_bounds = array<i64: 16, 1>}, {pipeline_mode = #tpu.pipeline_mode<synchronous>, transform_indices = @transform_2, window_bounds = array<i64: 16, 128>}, {pipeline_mode = #tpu.pipeline_mode<synchronous>, transform_indices = @transform_3, window_bounds = array<i64: 32, 128>}, {pipeline_mode = #tpu.pipeline_mode<synchronous>, transform_indices = @transform_4, window_bounds = array<i64: 32, 96>}, {pipeline_mode = #tpu.pipeline_mode<synchronous>, transform_indices = @transform_5, window_bounds = array<i64: 1, 96>}, {pipeline_mode = #tpu.pipeline_mode<synchronous>, transform_indices = @transform_6, window_bounds = array<i64: 96, 32>}, {pipeline_mode = #tpu.pipeline_mode<synchronous>, transform_indices = @transform_7, window_bounds = array<i64: 1, 32>}, {pipeline_mode = #tpu.pipeline_mode<synchronous>, transform_indices = @transform_8, window_bounds = array<i64: 32, 1>}, {pipeline_mode = #tpu.pipeline_mode<synchronous>, transform_indices = @transform_9, window_bounds = array<i64: 1, 1>}, {pipeline_mode = #tpu.pipeline_mode<synchronous>, transform_indices = @transform_10, window_bounds = array<i64: 16, 1>}]} {
    %cst = arith.constant 0.000000e+00 : f32
    %0 = vector.broadcast %cst : f32 to vector<16x32xf32>
    %c0 = arith.constant 0 : index
    %c0_0 = arith.constant 0 : index
    %1 = vector.load %arg13[%c0, %c0_0] : memref<16x32xf32, #tpu.memory_space<vmem>>, vector<16x32xf32>
    tpu.vector_store %arg13[%c0, %c0_0], %0 {strides = array<i32>} : memref<16x32xf32, #tpu.memory_space<vmem>>, vector<16x32xf32>,
    %cst_1 = arith.constant 0.000000e+00 : f32
    %2 = vector.broadcast %cst_1 : f32 to vector<16x32xf32>
    %c0_2 = arith.constant 0 : index
    %c0_3 = arith.constant 0 : index
    %3 = vector.load %arg14[%c0_2, %c0_3] : memref<16x32xf32, #tpu.memory_space<vmem>>, vector<16x32xf32>
    tpu.vector_store %arg14[%c0_2, %c0_3], %2 {strides = array<i32>} : memref<16x32xf32, #tpu.memory_space<vmem>>, vector<16x32xf32>,
    %cst_4 = arith.constant 0.000000e+00 : f32
    %4 = vector.broadcast %cst_4 : f32 to vector<16x32xf32>
    %c0_5 = arith.constant 0 : index
    %c0_6 = arith.constant 0 : index
    %5 = vector.load %arg15[%c0_5, %c0_6] : memref<16x32xf32, #tpu.memory_space<vmem>>, vector<16x32xf32>
    tpu.vector_store %arg15[%c0_5, %c0_6], %4 {strides = array<i32>} : memref<16x32xf32, #tpu.memory_space<vmem>>, vector<16x32xf32>,
    %c0_7 = arith.constant 0 : index
    %c0_8 = arith.constant 0 : index
    %6 = vector.load %arg3[%c0_7, %c0_8] : memref<16x1xi32, #tpu.memory_space<vmem>>, vector<16x1xi32>
    %c1_i32 = arith.constant 1 : i32
    %7 = vector.broadcast %c1_i32 : i32 to vector<16x1xi32>
    %8 = arith.subi %6, %7 : vector<16x1xi32>
    %c0_9 = arith.constant 0 : index
    %9 = memref.load %arg1[%c0_9] : memref<1xi32, #tpu.memory_space<smem>>
    %c0_10 = arith.constant 0 : index
    %c0_11 = arith.constant 0 : index
    %10 = vector.load %arg2[%c0_10, %c0_11] : memref<128x1xi32, #tpu.memory_space<vmem>>, vector<128x1xi32>
    %11 = tpu.iota {dimensions = array<i32: 1>} : vector<128x16xi32>
    %12 = vector.broadcast %10 : vector<128x1xi32> to vector<128x16xi32>
    %13 = arith.cmpi eq, %12, %11 : vector<128x16xi32>
    %14 = arith.extui %13 : vector<128x16xi1> to vector<128x16xi32>
    %15 = arith.sitofp %14 : vector<128x16xi32> to vector<128x16xf32>
    %c0_12 = arith.constant 0 : index
    %c0_13 = arith.constant 0 : index
    %16 = vector.load %arg4[%c0_12, %c0_13] : memref<16x128xf32, #tpu.memory_space<vmem>>, vector<16x128xf32>
    %cst_14 = arith.constant dense<0.000000e+00> : vector<128x128xf32>
    %17 = tpu.matmul %15, %16, %cst_14 {dimension_numbers = #tpu.dot_dimension_numbers<[1], [0], [0], [1], [0, 0, 1, 1], [], []>} : vector<128x16xf32>, vector<16x128xf32>, vector<128x128xf32> -> vector<128x128xf32>
    %18 = vector.shape_cast %17 : vector<128x128xf32> to vector<8x16x128xf32>
    %c0_15 = arith.constant 0 : index
    %c0_16 = arith.constant 0 : index
    %19 = vector.load %arg5[%c0_15, %c0_16] : memref<32x128xf32, #tpu.memory_space<vmem>>, vector<32x128xf32>
    %c0_i32 = arith.constant 0 : i32
    %20 = arith.cmpi sgt, %9, %c0_i32 : i32
    %21 = arith.extui %20 : i1 to i32
    %c0_i32_17 = arith.constant 0 : i32
    %22 = arith.cmpi ne, %21, %c0_i32_17 : i32
    scf.if %22 {
      %76 = vector.extract_strided_slice %18 {offsets = [0, 0, 0], sizes = [1, 16, 128], strides = [1, 1, 1]} : vector<8x16x128xf32> to vector<1x16x128xf32>
      %77 = vector.shape_cast %76 : vector<1x16x128xf32> to vector<16x128xf32>
      %c0_51 = arith.constant 0 : index
      %c0_52 = arith.constant 0 : index
      %78 = vector.load %arg13[%c0_51, %c0_52] : memref<16x32xf32, #tpu.memory_space<vmem>>, vector<16x32xf32>
      %cst_53 = arith.constant dense<0.000000e+00> : vector<16x128xf32>
      %79 = tpu.matmul %78, %19, %cst_53 {dimension_numbers = #tpu.dot_dimension_numbers<[1], [0], [0], [1], [0, 0, 1, 1], [], []>} : vector<16x32xf32>, vector<32x128xf32>, vector<16x128xf32> -> vector<16x128xf32>
      %80 = arith.addf %77, %79 : vector<16x128xf32>
      %81 = vector.extract_strided_slice %80 {offsets = [0, 0], sizes = [16, 96], strides = [1, 1]} : vector<16x128xf32> to vector<16x96xf32>
      %82 = arith.negf %81 : vector<16x96xf32>
      %83 = math.exp %82 : vector<16x96xf32>
      %cst_54 = arith.constant 1.000000e+00 : f32
      %84 = vector.broadcast %cst_54 : f32 to vector<16x96xf32>
      %85 = arith.addf %84, %83 : vector<16x96xf32>
      %86 = arith.divf %84, %85 : vector<16x96xf32>
      %87 = vector.extract_strided_slice %80 {offsets = [0, 96], sizes = [16, 32], strides = [1, 1]} : vector<16x128xf32> to vector<16x32xf32>
      %88 = math.tanh %87 : vector<16x32xf32>
      %89 = vector.extract_strided_slice %86 {offsets = [0, 32], sizes = [16, 32], strides = [1, 1]} : vector<16x96xf32> to vector<16x32xf32>
      %c0_55 = arith.constant 0 : index
      %c0_56 = arith.constant 0 : index
      %90 = vector.load %arg14[%c0_55, %c0_56] : memref<16x32xf32, #tpu.memory_space<vmem>>, vector<16x32xf32>
      %91 = arith.mulf %89, %90 : vector<16x32xf32>
      %92 = vector.extract_strided_slice %86 {offsets = [0, 0], sizes = [16, 32], strides = [1, 1]} : vector<16x96xf32> to vector<16x32xf32>
      %93 = arith.mulf %92, %88 : vector<16x32xf32>
      %94 = arith.addf %91, %93 : vector<16x32xf32>
      %95 = vector.extract_strided_slice %86 {offsets = [0, 64], sizes = [16, 32], strides = [1, 1]} : vector<16x96xf32> to vector<16x32xf32>
      %96 = math.tanh %94 : vector<16x32xf32>
      %97 = arith.mulf %95, %96 : vector<16x32xf32>
      %c0_57 = arith.constant 0 : index
      %c0_58 = arith.constant 0 : index
      %98 = vector.load %arg14[%c0_57, %c0_58] : memref<16x32xf32, #tpu.memory_space<vmem>>, vector<16x32xf32>
      tpu.vector_store %arg14[%c0_57, %c0_58], %94 {strides = array<i32>} : memref<16x32xf32, #tpu.memory_space<vmem>>, vector<16x32xf32>,
      %c0_59 = arith.constant 0 : index
      %c0_60 = arith.constant 0 : index
      %99 = vector.load %arg13[%c0_59, %c0_60] : memref<16x32xf32, #tpu.memory_space<vmem>>, vector<16x32xf32>
      tpu.vector_store %arg13[%c0_59, %c0_60], %97 {strides = array<i32>} : memref<16x32xf32, #tpu.memory_space<vmem>>, vector<16x32xf32>,
      %c0_i32_61 = arith.constant 0 : i32
      %100 = vector.broadcast %c0_i32_61 : i32 to vector<16x1xi32>
      %101 = arith.cmpi eq, %8, %100 : vector<16x1xi32>
      %c0_62 = arith.constant 0 : index
      %c0_63 = arith.constant 0 : index
      %102 = vector.load %arg15[%c0_62, %c0_63] : memref<16x32xf32, #tpu.memory_space<vmem>>, vector<16x32xf32>
      %103 = vector.shape_cast %101 : vector<16x1xi1> to vector<16x1xi1>
      %104 = vector.broadcast %103 : vector<16x1xi1> to vector<16x32xi1>
      %105 = arith.select %104, %97, %102 : vector<16x32xi1>, vector<16x32xf32>
      %c0_64 = arith.constant 0 : index
      %c0_65 = arith.constant 0 : index
      %106 = vector.load %arg15[%c0_64, %c0_65] : memref<16x32xf32, #tpu.memory_space<vmem>>, vector<16x32xf32>
      tpu.vector_store %arg15[%c0_64, %c0_65], %105 {strides = array<i32>} : memref<16x32xf32, #tpu.memory_space<vmem>>, vector<16x32xf32>,
    } else {
    }
    %c1_i32_18 = arith.constant 1 : i32
    %23 = arith.cmpi sgt, %9, %c1_i32_18 : i32
    %24 = arith.extui %23 : i1 to i32
    %c0_i32_19 = arith.constant 0 : i32
    %25 = arith.cmpi ne, %24, %c0_i32_19 : i32
    scf.if %25 {
      %76 = vector.extract_strided_slice %18 {offsets = [1, 0, 0], sizes = [1, 16, 128], strides = [1, 1, 1]} : vector<8x16x128xf32> to vector<1x16x128xf32>
      %77 = vector.shape_cast %76 : vector<1x16x128xf32> to vector<16x128xf32>
      %c0_51 = arith.constant 0 : index
      %c0_52 = arith.constant 0 : index
      %78 = vector.load %arg13[%c0_51, %c0_52] : memref<16x32xf32, #tpu.memory_space<vmem>>, vector<16x32xf32>
      %cst_53 = arith.constant dense<0.000000e+00> : vector<16x128xf32>
      %79 = tpu.matmul %78, %19, %cst_53 {dimension_numbers = #tpu.dot_dimension_numbers<[1], [0], [0], [1], [0, 0, 1, 1], [], []>} : vector<16x32xf32>, vector<32x128xf32>, vector<16x128xf32> -> vector<16x128xf32>
      %80 = arith.addf %77, %79 : vector<16x128xf32>
      %81 = vector.extract_strided_slice %80 {offsets = [0, 0], sizes = [16, 96], strides = [1, 1]} : vector<16x128xf32> to vector<16x96xf32>
      %82 = arith.negf %81 : vector<16x96xf32>
      %83 = math.exp %82 : vector<16x96xf32>
      %cst_54 = arith.constant 1.000000e+00 : f32
      %84 = vector.broadcast %cst_54 : f32 to vector<16x96xf32>
      %85 = arith.addf %84, %83 : vector<16x96xf32>
      %86 = arith.divf %84, %85 : vector<16x96xf32>
      %87 = vector.extract_strided_slice %80 {offsets = [0, 96], sizes = [16, 32], strides = [1, 1]} : vector<16x128xf32> to vector<16x32xf32>
      %88 = math.tanh %87 : vector<16x32xf32>
      %89 = vector.extract_strided_slice %86 {offsets = [0, 32], sizes = [16, 32], strides = [1, 1]} : vector<16x96xf32> to vector<16x32xf32>
      %c0_55 = arith.constant 0 : index
      %c0_56 = arith.constant 0 : index
      %90 = vector.load %arg14[%c0_55, %c0_56] : memref<16x32xf32, #tpu.memory_space<vmem>>, vector<16x32xf32>
      %91 = arith.mulf %89, %90 : vector<16x32xf32>
      %92 = vector.extract_strided_slice %86 {offsets = [0, 0], sizes = [16, 32], strides = [1, 1]} : vector<16x96xf32> to vector<16x32xf32>
      %93 = arith.mulf %92, %88 : vector<16x32xf32>
      %94 = arith.addf %91, %93 : vector<16x32xf32>
      %95 = vector.extract_strided_slice %86 {offsets = [0, 64], sizes = [16, 32], strides = [1, 1]} : vector<16x96xf32> to vector<16x32xf32>
      %96 = math.tanh %94 : vector<16x32xf32>
      %97 = arith.mulf %95, %96 : vector<16x32xf32>
      %c0_57 = arith.constant 0 : index
      %c0_58 = arith.constant 0 : index
      %98 = vector.load %arg14[%c0_57, %c0_58] : memref<16x32xf32, #tpu.memory_space<vmem>>, vector<16x32xf32>
      tpu.vector_store %arg14[%c0_57, %c0_58], %94 {strides = array<i32>} : memref<16x32xf32, #tpu.memory_space<vmem>>, vector<16x32xf32>,
      %c0_59 = arith.constant 0 : index
      %c0_60 = arith.constant 0 : index
      %99 = vector.load %arg13[%c0_59, %c0_60] : memref<16x32xf32, #tpu.memory_space<vmem>>, vector<16x32xf32>
      tpu.vector_store %arg13[%c0_59, %c0_60], %97 {strides = array<i32>} : memref<16x32xf32, #tpu.memory_space<vmem>>, vector<16x32xf32>,
      %c1_i32_61 = arith.constant 1 : i32
      %100 = vector.broadcast %c1_i32_61 : i32 to vector<16x1xi32>
      %101 = arith.cmpi eq, %8, %100 : vector<16x1xi32>
      %c0_62 = arith.constant 0 : index
      %c0_63 = arith.constant 0 : index
      %102 = vector.load %arg15[%c0_62, %c0_63] : memref<16x32xf32, #tpu.memory_space<vmem>>, vector<16x32xf32>
      %103 = vector.shape_cast %101 : vector<16x1xi1> to vector<16x1xi1>
      %104 = vector.broadcast %103 : vector<16x1xi1> to vector<16x32xi1>
      %105 = arith.select %104, %97, %102 : vector<16x32xi1>, vector<16x32xf32>
      %c0_64 = arith.constant 0 : index
      %c0_65 = arith.constant 0 : index
      %106 = vector.load %arg15[%c0_64, %c0_65] : memref<16x32xf32, #tpu.memory_space<vmem>>, vector<16x32xf32>
      tpu.vector_store %arg15[%c0_64, %c0_65], %105 {strides = array<i32>} : memref<16x32xf32, #tpu.memory_space<vmem>>, vector<16x32xf32>,
    } else {
    }
    %c2_i32 = arith.constant 2 : i32
    %26 = arith.cmpi sgt, %9, %c2_i32 : i32
    %27 = arith.extui %26 : i1 to i32
    %c0_i32_20 = arith.constant 0 : i32
    %28 = arith.cmpi ne, %27, %c0_i32_20 : i32
    scf.if %28 {
      %76 = vector.extract_strided_slice %18 {offsets = [2, 0, 0], sizes = [1, 16, 128], strides = [1, 1, 1]} : vector<8x16x128xf32> to vector<1x16x128xf32>
      %77 = vector.shape_cast %76 : vector<1x16x128xf32> to vector<16x128xf32>
      %c0_51 = arith.constant 0 : index
      %c0_52 = arith.constant 0 : index
      %78 = vector.load %arg13[%c0_51, %c0_52] : memref<16x32xf32, #tpu.memory_space<vmem>>, vector<16x32xf32>
      %cst_53 = arith.constant dense<0.000000e+00> : vector<16x128xf32>
      %79 = tpu.matmul %78, %19, %cst_53 {dimension_numbers = #tpu.dot_dimension_numbers<[1], [0], [0], [1], [0, 0, 1, 1], [], []>} : vector<16x32xf32>, vector<32x128xf32>, vector<16x128xf32> -> vector<16x128xf32>
      %80 = arith.addf %77, %79 : vector<16x128xf32>
      %81 = vector.extract_strided_slice %80 {offsets = [0, 0], sizes = [16, 96], strides = [1, 1]} : vector<16x128xf32> to vector<16x96xf32>
      %82 = arith.negf %81 : vector<16x96xf32>
      %83 = math.exp %82 : vector<16x96xf32>
      %cst_54 = arith.constant 1.000000e+00 : f32
      %84 = vector.broadcast %cst_54 : f32 to vector<16x96xf32>
      %85 = arith.addf %84, %83 : vector<16x96xf32>
      %86 = arith.divf %84, %85 : vector<16x96xf32>
      %87 = vector.extract_strided_slice %80 {offsets = [0, 96], sizes = [16, 32], strides = [1, 1]} : vector<16x128xf32> to vector<16x32xf32>
      %88 = math.tanh %87 : vector<16x32xf32>
      %89 = vector.extract_strided_slice %86 {offsets = [0, 32], sizes = [16, 32], strides = [1, 1]} : vector<16x96xf32> to vector<16x32xf32>
      %c0_55 = arith.constant 0 : index
      %c0_56 = arith.constant 0 : index
      %90 = vector.load %arg14[%c0_55, %c0_56] : memref<16x32xf32, #tpu.memory_space<vmem>>, vector<16x32xf32>
      %91 = arith.mulf %89, %90 : vector<16x32xf32>
      %92 = vector.extract_strided_slice %86 {offsets = [0, 0], sizes = [16, 32], strides = [1, 1]} : vector<16x96xf32> to vector<16x32xf32>
      %93 = arith.mulf %92, %88 : vector<16x32xf32>
      %94 = arith.addf %91, %93 : vector<16x32xf32>
      %95 = vector.extract_strided_slice %86 {offsets = [0, 64], sizes = [16, 32], strides = [1, 1]} : vector<16x96xf32> to vector<16x32xf32>
      %96 = math.tanh %94 : vector<16x32xf32>
      %97 = arith.mulf %95, %96 : vector<16x32xf32>
      %c0_57 = arith.constant 0 : index
      %c0_58 = arith.constant 0 : index
      %98 = vector.load %arg14[%c0_57, %c0_58] : memref<16x32xf32, #tpu.memory_space<vmem>>, vector<16x32xf32>
      tpu.vector_store %arg14[%c0_57, %c0_58], %94 {strides = array<i32>} : memref<16x32xf32, #tpu.memory_space<vmem>>, vector<16x32xf32>,
      %c0_59 = arith.constant 0 : index
      %c0_60 = arith.constant 0 : index
      %99 = vector.load %arg13[%c0_59, %c0_60] : memref<16x32xf32, #tpu.memory_space<vmem>>, vector<16x32xf32>
      tpu.vector_store %arg13[%c0_59, %c0_60], %97 {strides = array<i32>} : memref<16x32xf32, #tpu.memory_space<vmem>>, vector<16x32xf32>,
      %c2_i32_61 = arith.constant 2 : i32
      %100 = vector.broadcast %c2_i32_61 : i32 to vector<16x1xi32>
      %101 = arith.cmpi eq, %8, %100 : vector<16x1xi32>
      %c0_62 = arith.constant 0 : index
      %c0_63 = arith.constant 0 : index
      %102 = vector.load %arg15[%c0_62, %c0_63] : memref<16x32xf32, #tpu.memory_space<vmem>>, vector<16x32xf32>
      %103 = vector.shape_cast %101 : vector<16x1xi1> to vector<16x1xi1>
      %104 = vector.broadcast %103 : vector<16x1xi1> to vector<16x32xi1>
      %105 = arith.select %104, %97, %102 : vector<16x32xi1>, vector<16x32xf32>
      %c0_64 = arith.constant 0 : index
      %c0_65 = arith.constant 0 : index
      %106 = vector.load %arg15[%c0_64, %c0_65] : memref<16x32xf32, #tpu.memory_space<vmem>>, vector<16x32xf32>
      tpu.vector_store %arg15[%c0_64, %c0_65], %105 {strides = array<i32>} : memref<16x32xf32, #tpu.memory_space<vmem>>, vector<16x32xf32>,
    } else {
    }
    %c3_i32 = arith.constant 3 : i32
    %29 = arith.cmpi sgt, %9, %c3_i32 : i32
    %30 = arith.extui %29 : i1 to i32
    %c0_i32_21 = arith.constant 0 : i32
    %31 = arith.cmpi ne, %30, %c0_i32_21 : i32
    scf.if %31 {
      %76 = vector.extract_strided_slice %18 {offsets = [3, 0, 0], sizes = [1, 16, 128], strides = [1, 1, 1]} : vector<8x16x128xf32> to vector<1x16x128xf32>
      %77 = vector.shape_cast %76 : vector<1x16x128xf32> to vector<16x128xf32>
      %c0_51 = arith.constant 0 : index
      %c0_52 = arith.constant 0 : index
      %78 = vector.load %arg13[%c0_51, %c0_52] : memref<16x32xf32, #tpu.memory_space<vmem>>, vector<16x32xf32>
      %cst_53 = arith.constant dense<0.000000e+00> : vector<16x128xf32>
      %79 = tpu.matmul %78, %19, %cst_53 {dimension_numbers = #tpu.dot_dimension_numbers<[1], [0], [0], [1], [0, 0, 1, 1], [], []>} : vector<16x32xf32>, vector<32x128xf32>, vector<16x128xf32> -> vector<16x128xf32>
      %80 = arith.addf %77, %79 : vector<16x128xf32>
      %81 = vector.extract_strided_slice %80 {offsets = [0, 0], sizes = [16, 96], strides = [1, 1]} : vector<16x128xf32> to vector<16x96xf32>
      %82 = arith.negf %81 : vector<16x96xf32>
      %83 = math.exp %82 : vector<16x96xf32>
      %cst_54 = arith.constant 1.000000e+00 : f32
      %84 = vector.broadcast %cst_54 : f32 to vector<16x96xf32>
      %85 = arith.addf %84, %83 : vector<16x96xf32>
      %86 = arith.divf %84, %85 : vector<16x96xf32>
      %87 = vector.extract_strided_slice %80 {offsets = [0, 96], sizes = [16, 32], strides = [1, 1]} : vector<16x128xf32> to vector<16x32xf32>
      %88 = math.tanh %87 : vector<16x32xf32>
      %89 = vector.extract_strided_slice %86 {offsets = [0, 32], sizes = [16, 32], strides = [1, 1]} : vector<16x96xf32> to vector<16x32xf32>
      %c0_55 = arith.constant 0 : index
      %c0_56 = arith.constant 0 : index
      %90 = vector.load %arg14[%c0_55, %c0_56] : memref<16x32xf32, #tpu.memory_space<vmem>>, vector<16x32xf32>
      %91 = arith.mulf %89, %90 : vector<16x32xf32>
      %92 = vector.extract_strided_slice %86 {offsets = [0, 0], sizes = [16, 32], strides = [1, 1]} : vector<16x96xf32> to vector<16x32xf32>
      %93 = arith.mulf %92, %88 : vector<16x32xf32>
      %94 = arith.addf %91, %93 : vector<16x32xf32>
      %95 = vector.extract_strided_slice %86 {offsets = [0, 64], sizes = [16, 32], strides = [1, 1]} : vector<16x96xf32> to vector<16x32xf32>
      %96 = math.tanh %94 : vector<16x32xf32>
      %97 = arith.mulf %95, %96 : vector<16x32xf32>
      %c0_57 = arith.constant 0 : index
      %c0_58 = arith.constant 0 : index
      %98 = vector.load %arg14[%c0_57, %c0_58] : memref<16x32xf32, #tpu.memory_space<vmem>>, vector<16x32xf32>
      tpu.vector_store %arg14[%c0_57, %c0_58], %94 {strides = array<i32>} : memref<16x32xf32, #tpu.memory_space<vmem>>, vector<16x32xf32>,
      %c0_59 = arith.constant 0 : index
      %c0_60 = arith.constant 0 : index
      %99 = vector.load %arg13[%c0_59, %c0_60] : memref<16x32xf32, #tpu.memory_space<vmem>>, vector<16x32xf32>
      tpu.vector_store %arg13[%c0_59, %c0_60], %97 {strides = array<i32>} : memref<16x32xf32, #tpu.memory_space<vmem>>, vector<16x32xf32>,
      %c3_i32_61 = arith.constant 3 : i32
      %100 = vector.broadcast %c3_i32_61 : i32 to vector<16x1xi32>
      %101 = arith.cmpi eq, %8, %100 : vector<16x1xi32>
      %c0_62 = arith.constant 0 : index
      %c0_63 = arith.constant 0 : index
      %102 = vector.load %arg15[%c0_62, %c0_63] : memref<16x32xf32, #tpu.memory_space<vmem>>, vector<16x32xf32>
      %103 = vector.shape_cast %101 : vector<16x1xi1> to vector<16x1xi1>
      %104 = vector.broadcast %103 : vector<16x1xi1> to vector<16x32xi1>
      %105 = arith.select %104, %97, %102 : vector<16x32xi1>, vector<16x32xf32>
      %c0_64 = arith.constant 0 : index
      %c0_65 = arith.constant 0 : index
      %106 = vector.load %arg15[%c0_64, %c0_65] : memref<16x32xf32, #tpu.memory_space<vmem>>, vector<16x32xf32>
      tpu.vector_store %arg15[%c0_64, %c0_65], %105 {strides = array<i32>} : memref<16x32xf32, #tpu.memory_space<vmem>>, vector<16x32xf32>,
    } else {
    }
    %c4_i32 = arith.constant 4 : i32
    %32 = arith.cmpi sgt, %9, %c4_i32 : i32
    %33 = arith.extui %32 : i1 to i32
    %c0_i32_22 = arith.constant 0 : i32
    %34 = arith.cmpi ne, %33, %c0_i32_22 : i32
    scf.if %34 {
      %76 = vector.extract_strided_slice %18 {offsets = [4, 0, 0], sizes = [1, 16, 128], strides = [1, 1, 1]} : vector<8x16x128xf32> to vector<1x16x128xf32>
      %77 = vector.shape_cast %76 : vector<1x16x128xf32> to vector<16x128xf32>
      %c0_51 = arith.constant 0 : index
      %c0_52 = arith.constant 0 : index
      %78 = vector.load %arg13[%c0_51, %c0_52] : memref<16x32xf32, #tpu.memory_space<vmem>>, vector<16x32xf32>
      %cst_53 = arith.constant dense<0.000000e+00> : vector<16x128xf32>
      %79 = tpu.matmul %78, %19, %cst_53 {dimension_numbers = #tpu.dot_dimension_numbers<[1], [0], [0], [1], [0, 0, 1, 1], [], []>} : vector<16x32xf32>, vector<32x128xf32>, vector<16x128xf32> -> vector<16x128xf32>
      %80 = arith.addf %77, %79 : vector<16x128xf32>
      %81 = vector.extract_strided_slice %80 {offsets = [0, 0], sizes = [16, 96], strides = [1, 1]} : vector<16x128xf32> to vector<16x96xf32>
      %82 = arith.negf %81 : vector<16x96xf32>
      %83 = math.exp %82 : vector<16x96xf32>
      %cst_54 = arith.constant 1.000000e+00 : f32
      %84 = vector.broadcast %cst_54 : f32 to vector<16x96xf32>
      %85 = arith.addf %84, %83 : vector<16x96xf32>
      %86 = arith.divf %84, %85 : vector<16x96xf32>
      %87 = vector.extract_strided_slice %80 {offsets = [0, 96], sizes = [16, 32], strides = [1, 1]} : vector<16x128xf32> to vector<16x32xf32>
      %88 = math.tanh %87 : vector<16x32xf32>
      %89 = vector.extract_strided_slice %86 {offsets = [0, 32], sizes = [16, 32], strides = [1, 1]} : vector<16x96xf32> to vector<16x32xf32>
      %c0_55 = arith.constant 0 : index
      %c0_56 = arith.constant 0 : index
      %90 = vector.load %arg14[%c0_55, %c0_56] : memref<16x32xf32, #tpu.memory_space<vmem>>, vector<16x32xf32>
      %91 = arith.mulf %89, %90 : vector<16x32xf32>
      %92 = vector.extract_strided_slice %86 {offsets = [0, 0], sizes = [16, 32], strides = [1, 1]} : vector<16x96xf32> to vector<16x32xf32>
      %93 = arith.mulf %92, %88 : vector<16x32xf32>
      %94 = arith.addf %91, %93 : vector<16x32xf32>
      %95 = vector.extract_strided_slice %86 {offsets = [0, 64], sizes = [16, 32], strides = [1, 1]} : vector<16x96xf32> to vector<16x32xf32>
      %96 = math.tanh %94 : vector<16x32xf32>
      %97 = arith.mulf %95, %96 : vector<16x32xf32>
      %c0_57 = arith.constant 0 : index
      %c0_58 = arith.constant 0 : index
      %98 = vector.load %arg14[%c0_57, %c0_58] : memref<16x32xf32, #tpu.memory_space<vmem>>, vector<16x32xf32>
      tpu.vector_store %arg14[%c0_57, %c0_58], %94 {strides = array<i32>} : memref<16x32xf32, #tpu.memory_space<vmem>>, vector<16x32xf32>,
      %c0_59 = arith.constant 0 : index
      %c0_60 = arith.constant 0 : index
      %99 = vector.load %arg13[%c0_59, %c0_60] : memref<16x32xf32, #tpu.memory_space<vmem>>, vector<16x32xf32>
      tpu.vector_store %arg13[%c0_59, %c0_60], %97 {strides = array<i32>} : memref<16x32xf32, #tpu.memory_space<vmem>>, vector<16x32xf32>,
      %c4_i32_61 = arith.constant 4 : i32
      %100 = vector.broadcast %c4_i32_61 : i32 to vector<16x1xi32>
      %101 = arith.cmpi eq, %8, %100 : vector<16x1xi32>
      %c0_62 = arith.constant 0 : index
      %c0_63 = arith.constant 0 : index
      %102 = vector.load %arg15[%c0_62, %c0_63] : memref<16x32xf32, #tpu.memory_space<vmem>>, vector<16x32xf32>
      %103 = vector.shape_cast %101 : vector<16x1xi1> to vector<16x1xi1>
      %104 = vector.broadcast %103 : vector<16x1xi1> to vector<16x32xi1>
      %105 = arith.select %104, %97, %102 : vector<16x32xi1>, vector<16x32xf32>
      %c0_64 = arith.constant 0 : index
      %c0_65 = arith.constant 0 : index
      %106 = vector.load %arg15[%c0_64, %c0_65] : memref<16x32xf32, #tpu.memory_space<vmem>>, vector<16x32xf32>
      tpu.vector_store %arg15[%c0_64, %c0_65], %105 {strides = array<i32>} : memref<16x32xf32, #tpu.memory_space<vmem>>, vector<16x32xf32>,
    } else {
    }
    %c5_i32 = arith.constant 5 : i32
    %35 = arith.cmpi sgt, %9, %c5_i32 : i32
    %36 = arith.extui %35 : i1 to i32
    %c0_i32_23 = arith.constant 0 : i32
    %37 = arith.cmpi ne, %36, %c0_i32_23 : i32
    scf.if %37 {
      %76 = vector.extract_strided_slice %18 {offsets = [5, 0, 0], sizes = [1, 16, 128], strides = [1, 1, 1]} : vector<8x16x128xf32> to vector<1x16x128xf32>
      %77 = vector.shape_cast %76 : vector<1x16x128xf32> to vector<16x128xf32>
      %c0_51 = arith.constant 0 : index
      %c0_52 = arith.constant 0 : index
      %78 = vector.load %arg13[%c0_51, %c0_52] : memref<16x32xf32, #tpu.memory_space<vmem>>, vector<16x32xf32>
      %cst_53 = arith.constant dense<0.000000e+00> : vector<16x128xf32>
      %79 = tpu.matmul %78, %19, %cst_53 {dimension_numbers = #tpu.dot_dimension_numbers<[1], [0], [0], [1], [0, 0, 1, 1], [], []>} : vector<16x32xf32>, vector<32x128xf32>, vector<16x128xf32> -> vector<16x128xf32>
      %80 = arith.addf %77, %79 : vector<16x128xf32>
      %81 = vector.extract_strided_slice %80 {offsets = [0, 0], sizes = [16, 96], strides = [1, 1]} : vector<16x128xf32> to vector<16x96xf32>
      %82 = arith.negf %81 : vector<16x96xf32>
      %83 = math.exp %82 : vector<16x96xf32>
      %cst_54 = arith.constant 1.000000e+00 : f32
      %84 = vector.broadcast %cst_54 : f32 to vector<16x96xf32>
      %85 = arith.addf %84, %83 : vector<16x96xf32>
      %86 = arith.divf %84, %85 : vector<16x96xf32>
      %87 = vector.extract_strided_slice %80 {offsets = [0, 96], sizes = [16, 32], strides = [1, 1]} : vector<16x128xf32> to vector<16x32xf32>
      %88 = math.tanh %87 : vector<16x32xf32>
      %89 = vector.extract_strided_slice %86 {offsets = [0, 32], sizes = [16, 32], strides = [1, 1]} : vector<16x96xf32> to vector<16x32xf32>
      %c0_55 = arith.constant 0 : index
      %c0_56 = arith.constant 0 : index
      %90 = vector.load %arg14[%c0_55, %c0_56] : memref<16x32xf32, #tpu.memory_space<vmem>>, vector<16x32xf32>
      %91 = arith.mulf %89, %90 : vector<16x32xf32>
      %92 = vector.extract_strided_slice %86 {offsets = [0, 0], sizes = [16, 32], strides = [1, 1]} : vector<16x96xf32> to vector<16x32xf32>
      %93 = arith.mulf %92, %88 : vector<16x32xf32>
      %94 = arith.addf %91, %93 : vector<16x32xf32>
      %95 = vector.extract_strided_slice %86 {offsets = [0, 64], sizes = [16, 32], strides = [1, 1]} : vector<16x96xf32> to vector<16x32xf32>
      %96 = math.tanh %94 : vector<16x32xf32>
      %97 = arith.mulf %95, %96 : vector<16x32xf32>
      %c0_57 = arith.constant 0 : index
      %c0_58 = arith.constant 0 : index
      %98 = vector.load %arg14[%c0_57, %c0_58] : memref<16x32xf32, #tpu.memory_space<vmem>>, vector<16x32xf32>
      tpu.vector_store %arg14[%c0_57, %c0_58], %94 {strides = array<i32>} : memref<16x32xf32, #tpu.memory_space<vmem>>, vector<16x32xf32>,
      %c0_59 = arith.constant 0 : index
      %c0_60 = arith.constant 0 : index
      %99 = vector.load %arg13[%c0_59, %c0_60] : memref<16x32xf32, #tpu.memory_space<vmem>>, vector<16x32xf32>
      tpu.vector_store %arg13[%c0_59, %c0_60], %97 {strides = array<i32>} : memref<16x32xf32, #tpu.memory_space<vmem>>, vector<16x32xf32>,
      %c5_i32_61 = arith.constant 5 : i32
      %100 = vector.broadcast %c5_i32_61 : i32 to vector<16x1xi32>
      %101 = arith.cmpi eq, %8, %100 : vector<16x1xi32>
      %c0_62 = arith.constant 0 : index
      %c0_63 = arith.constant 0 : index
      %102 = vector.load %arg15[%c0_62, %c0_63] : memref<16x32xf32, #tpu.memory_space<vmem>>, vector<16x32xf32>
      %103 = vector.shape_cast %101 : vector<16x1xi1> to vector<16x1xi1>
      %104 = vector.broadcast %103 : vector<16x1xi1> to vector<16x32xi1>
      %105 = arith.select %104, %97, %102 : vector<16x32xi1>, vector<16x32xf32>
      %c0_64 = arith.constant 0 : index
      %c0_65 = arith.constant 0 : index
      %106 = vector.load %arg15[%c0_64, %c0_65] : memref<16x32xf32, #tpu.memory_space<vmem>>, vector<16x32xf32>
      tpu.vector_store %arg15[%c0_64, %c0_65], %105 {strides = array<i32>} : memref<16x32xf32, #tpu.memory_space<vmem>>, vector<16x32xf32>,
    } else {
    }
    %c6_i32 = arith.constant 6 : i32
    %38 = arith.cmpi sgt, %9, %c6_i32 : i32
    %39 = arith.extui %38 : i1 to i32
    %c0_i32_24 = arith.constant 0 : i32
    %40 = arith.cmpi ne, %39, %c0_i32_24 : i32
    scf.if %40 {
      %76 = vector.extract_strided_slice %18 {offsets = [6, 0, 0], sizes = [1, 16, 128], strides = [1, 1, 1]} : vector<8x16x128xf32> to vector<1x16x128xf32>
      %77 = vector.shape_cast %76 : vector<1x16x128xf32> to vector<16x128xf32>
      %c0_51 = arith.constant 0 : index
      %c0_52 = arith.constant 0 : index
      %78 = vector.load %arg13[%c0_51, %c0_52] : memref<16x32xf32, #tpu.memory_space<vmem>>, vector<16x32xf32>
      %cst_53 = arith.constant dense<0.000000e+00> : vector<16x128xf32>
      %79 = tpu.matmul %78, %19, %cst_53 {dimension_numbers = #tpu.dot_dimension_numbers<[1], [0], [0], [1], [0, 0, 1, 1], [], []>} : vector<16x32xf32>, vector<32x128xf32>, vector<16x128xf32> -> vector<16x128xf32>
      %80 = arith.addf %77, %79 : vector<16x128xf32>
      %81 = vector.extract_strided_slice %80 {offsets = [0, 0], sizes = [16, 96], strides = [1, 1]} : vector<16x128xf32> to vector<16x96xf32>
      %82 = arith.negf %81 : vector<16x96xf32>
      %83 = math.exp %82 : vector<16x96xf32>
      %cst_54 = arith.constant 1.000000e+00 : f32
      %84 = vector.broadcast %cst_54 : f32 to vector<16x96xf32>
      %85 = arith.addf %84, %83 : vector<16x96xf32>
      %86 = arith.divf %84, %85 : vector<16x96xf32>
      %87 = vector.extract_strided_slice %80 {offsets = [0, 96], sizes = [16, 32], strides = [1, 1]} : vector<16x128xf32> to vector<16x32xf32>
      %88 = math.tanh %87 : vector<16x32xf32>
      %89 = vector.extract_strided_slice %86 {offsets = [0, 32], sizes = [16, 32], strides = [1, 1]} : vector<16x96xf32> to vector<16x32xf32>
      %c0_55 = arith.constant 0 : index
      %c0_56 = arith.constant 0 : index
      %90 = vector.load %arg14[%c0_55, %c0_56] : memref<16x32xf32, #tpu.memory_space<vmem>>, vector<16x32xf32>
      %91 = arith.mulf %89, %90 : vector<16x32xf32>
      %92 = vector.extract_strided_slice %86 {offsets = [0, 0], sizes = [16, 32], strides = [1, 1]} : vector<16x96xf32> to vector<16x32xf32>
      %93 = arith.mulf %92, %88 : vector<16x32xf32>
      %94 = arith.addf %91, %93 : vector<16x32xf32>
      %95 = vector.extract_strided_slice %86 {offsets = [0, 64], sizes = [16, 32], strides = [1, 1]} : vector<16x96xf32> to vector<16x32xf32>
      %96 = math.tanh %94 : vector<16x32xf32>
      %97 = arith.mulf %95, %96 : vector<16x32xf32>
      %c0_57 = arith.constant 0 : index
      %c0_58 = arith.constant 0 : index
      %98 = vector.load %arg14[%c0_57, %c0_58] : memref<16x32xf32, #tpu.memory_space<vmem>>, vector<16x32xf32>
      tpu.vector_store %arg14[%c0_57, %c0_58], %94 {strides = array<i32>} : memref<16x32xf32, #tpu.memory_space<vmem>>, vector<16x32xf32>,
      %c0_59 = arith.constant 0 : index
      %c0_60 = arith.constant 0 : index
      %99 = vector.load %arg13[%c0_59, %c0_60] : memref<16x32xf32, #tpu.memory_space<vmem>>, vector<16x32xf32>
      tpu.vector_store %arg13[%c0_59, %c0_60], %97 {strides = array<i32>} : memref<16x32xf32, #tpu.memory_space<vmem>>, vector<16x32xf32>,
      %c6_i32_61 = arith.constant 6 : i32
      %100 = vector.broadcast %c6_i32_61 : i32 to vector<16x1xi32>
      %101 = arith.cmpi eq, %8, %100 : vector<16x1xi32>
      %c0_62 = arith.constant 0 : index
      %c0_63 = arith.constant 0 : index
      %102 = vector.load %arg15[%c0_62, %c0_63] : memref<16x32xf32, #tpu.memory_space<vmem>>, vector<16x32xf32>
      %103 = vector.shape_cast %101 : vector<16x1xi1> to vector<16x1xi1>
      %104 = vector.broadcast %103 : vector<16x1xi1> to vector<16x32xi1>
      %105 = arith.select %104, %97, %102 : vector<16x32xi1>, vector<16x32xf32>
      %c0_64 = arith.constant 0 : index
      %c0_65 = arith.constant 0 : index
      %106 = vector.load %arg15[%c0_64, %c0_65] : memref<16x32xf32, #tpu.memory_space<vmem>>, vector<16x32xf32>
      tpu.vector_store %arg15[%c0_64, %c0_65], %105 {strides = array<i32>} : memref<16x32xf32, #tpu.memory_space<vmem>>, vector<16x32xf32>,
    } else {
    }
    %c7_i32 = arith.constant 7 : i32
    %41 = arith.cmpi sgt, %9, %c7_i32 : i32
    %42 = arith.extui %41 : i1 to i32
    %c0_i32_25 = arith.constant 0 : i32
    %43 = arith.cmpi ne, %42, %c0_i32_25 : i32
    scf.if %43 {
      %76 = vector.extract_strided_slice %18 {offsets = [7, 0, 0], sizes = [1, 16, 128], strides = [1, 1, 1]} : vector<8x16x128xf32> to vector<1x16x128xf32>
      %77 = vector.shape_cast %76 : vector<1x16x128xf32> to vector<16x128xf32>
      %c0_51 = arith.constant 0 : index
      %c0_52 = arith.constant 0 : index
      %78 = vector.load %arg13[%c0_51, %c0_52] : memref<16x32xf32, #tpu.memory_space<vmem>>, vector<16x32xf32>
      %cst_53 = arith.constant dense<0.000000e+00> : vector<16x128xf32>
      %79 = tpu.matmul %78, %19, %cst_53 {dimension_numbers = #tpu.dot_dimension_numbers<[1], [0], [0], [1], [0, 0, 1, 1], [], []>} : vector<16x32xf32>, vector<32x128xf32>, vector<16x128xf32> -> vector<16x128xf32>
      %80 = arith.addf %77, %79 : vector<16x128xf32>
      %81 = vector.extract_strided_slice %80 {offsets = [0, 0], sizes = [16, 96], strides = [1, 1]} : vector<16x128xf32> to vector<16x96xf32>
      %82 = arith.negf %81 : vector<16x96xf32>
      %83 = math.exp %82 : vector<16x96xf32>
      %cst_54 = arith.constant 1.000000e+00 : f32
      %84 = vector.broadcast %cst_54 : f32 to vector<16x96xf32>
      %85 = arith.addf %84, %83 : vector<16x96xf32>
      %86 = arith.divf %84, %85 : vector<16x96xf32>
      %87 = vector.extract_strided_slice %80 {offsets = [0, 96], sizes = [16, 32], strides = [1, 1]} : vector<16x128xf32> to vector<16x32xf32>
      %88 = math.tanh %87 : vector<16x32xf32>
      %89 = vector.extract_strided_slice %86 {offsets = [0, 32], sizes = [16, 32], strides = [1, 1]} : vector<16x96xf32> to vector<16x32xf32>
      %c0_55 = arith.constant 0 : index
      %c0_56 = arith.constant 0 : index
      %90 = vector.load %arg14[%c0_55, %c0_56] : memref<16x32xf32, #tpu.memory_space<vmem>>, vector<16x32xf32>
      %91 = arith.mulf %89, %90 : vector<16x32xf32>
      %92 = vector.extract_strided_slice %86 {offsets = [0, 0], sizes = [16, 32], strides = [1, 1]} : vector<16x96xf32> to vector<16x32xf32>
      %93 = arith.mulf %92, %88 : vector<16x32xf32>
      %94 = arith.addf %91, %93 : vector<16x32xf32>
      %95 = vector.extract_strided_slice %86 {offsets = [0, 64], sizes = [16, 32], strides = [1, 1]} : vector<16x96xf32> to vector<16x32xf32>
      %96 = math.tanh %94 : vector<16x32xf32>
      %97 = arith.mulf %95, %96 : vector<16x32xf32>
      %c0_57 = arith.constant 0 : index
      %c0_58 = arith.constant 0 : index
      %98 = vector.load %arg14[%c0_57, %c0_58] : memref<16x32xf32, #tpu.memory_space<vmem>>, vector<16x32xf32>
      tpu.vector_store %arg14[%c0_57, %c0_58], %94 {strides = array<i32>} : memref<16x32xf32, #tpu.memory_space<vmem>>, vector<16x32xf32>,
      %c0_59 = arith.constant 0 : index
      %c0_60 = arith.constant 0 : index
      %99 = vector.load %arg13[%c0_59, %c0_60] : memref<16x32xf32, #tpu.memory_space<vmem>>, vector<16x32xf32>
      tpu.vector_store %arg13[%c0_59, %c0_60], %97 {strides = array<i32>} : memref<16x32xf32, #tpu.memory_space<vmem>>, vector<16x32xf32>,
      %c7_i32_61 = arith.constant 7 : i32
      %100 = vector.broadcast %c7_i32_61 : i32 to vector<16x1xi32>
      %101 = arith.cmpi eq, %8, %100 : vector<16x1xi32>
      %c0_62 = arith.constant 0 : index
      %c0_63 = arith.constant 0 : index
      %102 = vector.load %arg15[%c0_62, %c0_63] : memref<16x32xf32, #tpu.memory_space<vmem>>, vector<16x32xf32>
      %103 = vector.shape_cast %101 : vector<16x1xi1> to vector<16x1xi1>
      %104 = vector.broadcast %103 : vector<16x1xi1> to vector<16x32xi1>
      %105 = arith.select %104, %97, %102 : vector<16x32xi1>, vector<16x32xf32>
      %c0_64 = arith.constant 0 : index
      %c0_65 = arith.constant 0 : index
      %106 = vector.load %arg15[%c0_64, %c0_65] : memref<16x32xf32, #tpu.memory_space<vmem>>, vector<16x32xf32>
      tpu.vector_store %arg15[%c0_64, %c0_65], %105 {strides = array<i32>} : memref<16x32xf32, #tpu.memory_space<vmem>>, vector<16x32xf32>,
    } else {
    }
    %c0_26 = arith.constant 0 : index
    %c0_27 = arith.constant 0 : index
    %44 = vector.load %arg15[%c0_26, %c0_27] : memref<16x32xf32, #tpu.memory_space<vmem>>, vector<16x32xf32>
    %cst_28 = arith.constant 0.000000e+00 : f32
    %45 = vector.broadcast %cst_28 : f32 to vector<16x32xf32>
    %46 = arith.cmpf ogt, %44, %45 : vector<16x32xf32>
    %cst_29 = arith.constant 0.00999999977 : f32
    %47 = vector.broadcast %cst_29 : f32 to vector<16x32xf32>
    %48 = arith.mulf %47, %44 : vector<16x32xf32>
    %49 = arith.select %46, %44, %48 : vector<16x32xi1>, vector<16x32xf32>
    %c0_30 = arith.constant 0 : index
    %c0_31 = arith.constant 0 : index
    %50 = vector.load %arg6[%c0_30, %c0_31] : memref<32x96xf32, #tpu.memory_space<vmem>>, vector<32x96xf32>
    %cst_32 = arith.constant dense<0.000000e+00> : vector<16x96xf32>
    %51 = tpu.matmul %49, %50, %cst_32 {dimension_numbers = #tpu.dot_dimension_numbers<[1], [0], [0], [1], [0, 0, 1, 1], [], []>} : vector<16x32xf32>, vector<32x96xf32>, vector<16x96xf32> -> vector<16x96xf32>
    %c0_33 = arith.constant 0 : index
    %c0_34 = arith.constant 0 : index
    %52 = vector.load %arg7[%c0_33, %c0_34] : memref<1x96xf32, #tpu.memory_space<vmem>>, vector<1x96xf32>
    %53 = vector.broadcast %52 : vector<1x96xf32> to vector<16x96xf32>
    %54 = arith.addf %51, %53 : vector<16x96xf32>
    %cst_35 = arith.constant 0.000000e+00 : f32
    %55 = vector.broadcast %cst_35 : f32 to vector<16x96xf32>
    %56 = arith.cmpf ogt, %54, %55 : vector<16x96xf32>
    %cst_36 = arith.constant 0.00999999977 : f32
    %57 = vector.broadcast %cst_36 : f32 to vector<16x96xf32>
    %58 = arith.mulf %57, %54 : vector<16x96xf32>
    %59 = arith.select %56, %54, %58 : vector<16x96xi1>, vector<16x96xf32>
    %c0_37 = arith.constant 0 : index
    %c0_38 = arith.constant 0 : index
    %60 = vector.load %arg8[%c0_37, %c0_38] : memref<96x32xf32, #tpu.memory_space<vmem>>, vector<96x32xf32>
    %cst_39 = arith.constant dense<0.000000e+00> : vector<16x32xf32>
    %61 = tpu.matmul %59, %60, %cst_39 {dimension_numbers = #tpu.dot_dimension_numbers<[1], [0], [0], [1], [0, 0, 1, 1], [], []>} : vector<16x96xf32>, vector<96x32xf32>, vector<16x32xf32> -> vector<16x32xf32>
    %c0_40 = arith.constant 0 : index
    %c0_41 = arith.constant 0 : index
    %62 = vector.load %arg9[%c0_40, %c0_41] : memref<1x32xf32, #tpu.memory_space<vmem>>, vector<1x32xf32>
    %63 = vector.broadcast %62 : vector<1x32xf32> to vector<16x32xf32>
    %64 = arith.addf %61, %63 : vector<16x32xf32>
    %cst_42 = arith.constant 0.000000e+00 : f32
    %65 = vector.broadcast %cst_42 : f32 to vector<16x32xf32>
    %66 = arith.cmpf ogt, %64, %65 : vector<16x32xf32>
    %cst_43 = arith.constant 0.00999999977 : f32
    %67 = vector.broadcast %cst_43 : f32 to vector<16x32xf32>
    %68 = arith.mulf %67, %64 : vector<16x32xf32>
    %69 = arith.select %66, %64, %68 : vector<16x32xi1>, vector<16x32xf32>
    %c0_44 = arith.constant 0 : index
    %c0_45 = arith.constant 0 : index
    %70 = vector.load %arg10[%c0_44, %c0_45] : memref<32x1xf32, #tpu.memory_space<vmem>>, vector<32x1xf32>
    %cst_46 = arith.constant dense<0.000000e+00> : vector<16x1xf32>
    %71 = tpu.matmul %69, %70, %cst_46 {dimension_numbers = #tpu.dot_dimension_numbers<[1], [0], [0], [1], [0, 0, 1, 1], [], []>} : vector<16x32xf32>, vector<32x1xf32>, vector<16x1xf32> -> vector<16x1xf32>
    %c0_47 = arith.constant 0 : index
    %c0_48 = arith.constant 0 : index
    %72 = vector.load %arg11[%c0_47, %c0_48] : memref<1x1xf32, #tpu.memory_space<vmem>>, vector<1x1xf32>
    %73 = vector.broadcast %72 : vector<1x1xf32> to vector<16x1xf32>
    %74 = arith.addf %71, %73 : vector<16x1xf32>
    %c0_49 = arith.constant 0 : index
    %c0_50 = arith.constant 0 : index
    %75 = vector.load %arg12[%c0_49, %c0_50] : memref<16x1xf32, #tpu.memory_space<vmem>>, vector<16x1xf32>
    tpu.vector_store %arg12[%c0_49, %c0_50], %74 {strides = array<i32>} : memref<16x1xf32, #tpu.memory_space<vmem>>, vector<16x1xf32>,
    return
  }
  func.func @transform_0(%arg0: i32, %arg1: memref<1xi32, #tpu.memory_space<smem>>) -> (i32, i32) {
    %c0_i32 = arith.constant 0 : i32
    %c0_i32_0 = arith.constant 0 : i32
    %c0_i32_1 = arith.constant 0 : i32
    return %c0_i32, %c0_i32_0 : i32, i32
  }
  func.func @transform_1(%arg0: i32, %arg1: memref<1xi32, #tpu.memory_space<smem>>) -> (i32, i32) {
    %c0_i32 = arith.constant 0 : i32
    %c0_i32_0 = arith.constant 0 : i32
    %c0_i32_1 = arith.constant 0 : i32
    return %c0_i32, %c0_i32_0 : i32, i32
  }
  func.func @transform_2(%arg0: i32, %arg1: memref<1xi32, #tpu.memory_space<smem>>) -> (i32, i32) {
    %c0_i32 = arith.constant 0 : i32
    %c0_i32_0 = arith.constant 0 : i32
    %c0_i32_1 = arith.constant 0 : i32
    return %c0_i32, %c0_i32_0 : i32, i32
  }
  func.func @transform_3(%arg0: i32, %arg1: memref<1xi32, #tpu.memory_space<smem>>) -> (i32, i32) {
    %c0_i32 = arith.constant 0 : i32
    %c0_i32_0 = arith.constant 0 : i32
    %c0_i32_1 = arith.constant 0 : i32
    return %c0_i32, %c0_i32_0 : i32, i32
  }
  func.func @transform_4(%arg0: i32, %arg1: memref<1xi32, #tpu.memory_space<smem>>) -> (i32, i32) {
    %c0_i32 = arith.constant 0 : i32
    %c0_i32_0 = arith.constant 0 : i32
    %c0_i32_1 = arith.constant 0 : i32
    return %c0_i32, %c0_i32_0 : i32, i32
  }
  func.func @transform_5(%arg0: i32, %arg1: memref<1xi32, #tpu.memory_space<smem>>) -> (i32, i32) {
    %c0_i32 = arith.constant 0 : i32
    %c0_i32_0 = arith.constant 0 : i32
    %c0_i32_1 = arith.constant 0 : i32
    return %c0_i32, %c0_i32_0 : i32, i32
  }
  func.func @transform_6(%arg0: i32, %arg1: memref<1xi32, #tpu.memory_space<smem>>) -> (i32, i32) {
    %c0_i32 = arith.constant 0 : i32
    %c0_i32_0 = arith.constant 0 : i32
    %c0_i32_1 = arith.constant 0 : i32
    return %c0_i32, %c0_i32_0 : i32, i32
  }
  func.func @transform_7(%arg0: i32, %arg1: memref<1xi32, #tpu.memory_space<smem>>) -> (i32, i32) {
    %c0_i32 = arith.constant 0 : i32
    %c0_i32_0 = arith.constant 0 : i32
    %c0_i32_1 = arith.constant 0 : i32
    return %c0_i32, %c0_i32_0 : i32, i32
  }
  func.func @transform_8(%arg0: i32, %arg1: memref<1xi32, #tpu.memory_space<smem>>) -> (i32, i32) {
    %c0_i32 = arith.constant 0 : i32
    %c0_i32_0 = arith.constant 0 : i32
    %c0_i32_1 = arith.constant 0 : i32
    return %c0_i32, %c0_i32_0 : i32, i32
  }
  func.func @transform_9(%arg0: i32, %arg1: memref<1xi32, #tpu.memory_space<smem>>) -> (i32, i32) {
    %c0_i32 = arith.constant 0 : i32
    %c0_i32_0 = arith.constant 0 : i32
    %c0_i32_1 = arith.constant 0 : i32
    return %c0_i32, %c0_i32_0 : i32, i32
  }
  func.func @transform_10(%arg0: i32, %arg1: memref<1xi32, #tpu.memory_space<smem>>) -> (i32, i32) {
    %c0_i32 = arith.constant 0 : i32
    %c0_i32_0 = arith.constant 0 : i32
    %c0_i32_1 = arith.constant 0 : i32
    return %c0_i32, %c0_i32_0 : i32, i32
  }
}

</mosaic_0001>

<bundles_post_ra>
// kernel: tpu_custom_call.1
= control target key start
LH: loop header
LB: loop body
LE: loop exit
PB: predicated region body
PF: predicated region fallthrough
CT: control target
= control target key end

     0   :  { %vm39_vm0 = vcmask 261120   ;;  %v2915_v0 = vmov 0   ;;  %v2916_v4 = vmov 0.0   ;;  %v67_v26 = vlaneseq  ;;  %s3476_s1 = inlined_call_operand.vmem [shape: s32[128,1], index: 1, kind: input, shape index: {}]   ;;  %s3477_s0 = inlined_call_operand.<no memory space> [shape: s32[1], index: 0, kind: input, shape index: {}]   ;;  %s3478_s5 = inlined_call_operand.vmem [shape: f32[32,96], index: 5, kind: input, shape index: {}]   ;;  %s3479_s6 = inlined_call_operand.vmem [shape: f32[1,96], index: 6, kind: input, shape index: {}]   ;;  %s3480_s7 = inlined_call_operand.vmem [shape: f32[96,32], index: 7, kind: input, shape index: {}]   ;;  %s3481_s8 = inlined_call_operand.vmem [shape: f32[1,32], index: 8, kind: input, shape index: {}]   ;;  %s3482_s9 = inlined_call_operand.vmem [shape: f32[32,1], index: 9, kind: input, shape index: {}]   ;;  %s3483_s10 = inlined_call_operand.<no memory space> [shape: f32[1,1], index: 10, kind: input, shape index: {}]   ;;  %s3484_s11 = inlined_call_operand.vmem [shape: f32[16,1], index: 11, kind: output, shape index: {}]   ;;  %s3485_s2 = inlined_call_operand.vmem [shape: s32[16,1], index: 2, kind: input, shape index: {}]   ;;  %s3486_s3 = inlined_call_operand.vmem [shape: f32[16,128], index: 3, kind: input, shape index: {}]   ;;  %s3487_s4 = inlined_call_operand.vmem [shape: f32[32,128], index: 4, kind: input, shape index: {}]  }
   0x1   :  { %2770 = vset.pattern.permute.xlu1 %v2915_v0  ;;  %2769 = vset.pattern.permute.xlu0 %v2915_v0  ;;  %v52_v1 = vld [vmem:[%s3476_s1 + $0x8] sm:$0xff]  ;;  %v51_v2 = vld [vmem:[%s3476_s1] sm:$0xff]  ;;  %v17_v3 = vstv %s3483_s10  ;;  %40 = vst.msk [vmem:[#allocation2] sm:$0xff] %vm39_vm0, %v2916_v4  ;;  %41 = vst.msk [vmem:[#allocation2 + $0x8] sm:$0xff] %vm39_vm0, %v2916_v4  ;;  %vm167_vm1 = vcmask 130048   ;;  %p2319_p0 = scmp.le.s32.totalorder %s3477_s0, 0 }
   0x2   :  { %42 = vst.msk [vmem:[#allocation3] sm:$0xff] %vm39_vm0, %v2916_v4  ;;  %43 = vst.msk [vmem:[#allocation3 + $0x8] sm:$0xff] %vm39_vm0, %v2916_v4  ;;  %73 = vperm.xlu1 %2770, %v52_v1   ;;  %70 = vperm.xlu0 %2769, %v51_v2   ;;  %v60_v5 = vld [vmem:[%s3476_s1 + $0x48] sm:$0xff]  ;;  %v59_v6 = vld [vmem:[%s3476_s1 + $0x40] sm:$0xff]  ;;  %v3088_v27 = vand.u32 127, %v67_v26  ;;  %s2919_s23 = smov (!%p2319_p0), 64  }
   0x3   :  { %44 = vst.msk [vmem:[#allocation4] sm:$0xff] %vm39_vm0, %v2916_v4  ;;  %45 = vst.msk [vmem:[#allocation4 + $0x8] sm:$0xff] %vm39_vm0, %v2916_v4  ;;  %v61_v7 = vld [vmem:[%s3476_s1 + $0x50] sm:$0xff]  ;;  %v46_v8 = vld [vmem:[%s3485_s2] sm:$0xff]  ;;  %s2920_s24 = smov (!%p2319_p0), 96  }
   0x4   :  { %18 = vst [vmem:[#allocation7] sm:$0x1] %v17_v3  ;;  %v47_v9 = vld [vmem:[%s3485_s2 + $0x8] sm:$0xff]  ;;  %v53_v10 = vld [vmem:[%s3476_s1 + $0x10] sm:$0xff]  ;;  %v3048_v11 = vadd.s32 4294967295, %v46_v8  ;;  %v165_v13 = vld [vmem:[%s3486_s3] sm:$0xff] }
   0x5   :  { %v3050_v12 = vadd.s32 4294967295, %v47_v9  ;;  %v166_v14 = vld [vmem:[%s3486_s3 + $0x8] sm:$0xff]  ;;  %v62_v16 = vld [vmem:[%s3476_s1 + $0x58] sm:$0xff]  ;;  %v63_v18 = vld [vmem:[%s3476_s1 + $0x60] sm:$0xff]  ;;  %s2917_s3 = smov (!%p2319_p0), 32  }
   0x6   :  { %97 = vperm.xlu1 %2770, %v60_v5   ;;  %94 = vperm.xlu0 %2769, %v59_v6   ;;  %v2625_v15 = vpack.c.bf16 %v166_v14, %v165_v13  ;;  %v54_v17 = vld [vmem:[%s3476_s1 + $0x18] sm:$0xff]  ;;  %v55_v19 = vld [vmem:[%s3476_s1 + $0x20] sm:$0xff]  ;;  %v64_v20 = vld [vmem:[%s3476_s1 + $0x68] sm:$0xff] }
   0x7   :  { %v56_v21 = vld [vmem:[%s3476_s1 + $0x28] sm:$0xff]  ;;  %v65_v22 = vld [vmem:[%s3476_s1 + $0x70] sm:$0xff]  ;;  %v66_v24 = vld [vmem:[%s3476_s1 + $0x78] sm:$0xff] }
   0x8   :  { %2626 = vmatprep.subr.bf16.mxu0 %v2625_v15  ;;  %2733 = vmatprep.subr.bf16.mxu1 %v2625_v15  ;;  %v57_v23 = vld [vmem:[%s3476_s1 + $0x30] sm:$0xff]  ;;  %v58_v25 = vld [vmem:[%s3476_s1 + $0x38] sm:$0xff]  ;;  %v3141_v60 = vld [vmem:[%s3487_s4] sm:$0xff] }
   0x9   :  { %2628 = vmatpush3.bf16.msra.mxu0 %v2625_v15  ;;  %2734 = vmatpush3.bf16.msra.mxu1 %v2625_v15  ;;  %v3146_v61 = vld [vmem:[%s3487_s4 + $0x8] sm:$0xff]  ;;  %v3151_v62 = vld [vmem:[%s3487_s4 + $0x10] sm:$0xff]  ;;  %v3156_v63 = vld [vmem:[%s3487_s4 + $0x18] sm:$0xff] }
   0xa   :  { %100 = vperm.xlu1 %2770, %v61_v7   ;;  %76 = vperm.xlu0 %2769, %v53_v10  }
   0xe   :  { %103 = vperm.xlu1 %2770, %v62_v16   ;;  %79 = vperm.xlu0 %2769, %v54_v17  }
  0x12   :  { %106 = vperm.xlu1 %2770, %v63_v18   ;;  %82 = vperm.xlu0 %2769, %v55_v19   ;;  %v2629_v18 = vpack.c.bf16 (!%p2319_p0), %v3146_v61, %v3141_v60  ;;  %v2633_v19 = vpack.c.bf16 (!%p2319_p0), %v3156_v63, %v3151_v62 }
  0x14   :  { %2630 = vmatprep.subr.bf16.mxu0 (!%p2319_p0), %v2629_v18 }
  0x16   :  { %109 = vperm.xlu1 %2770, %v64_v20   ;;  %85 = vperm.xlu0 %2769, %v56_v21   ;;  %v369_v20 = vld [vmem:[#allocation2] sm:$0xff] (!%p2319_p0)  ;;  %v468_v21 = vld [vmem:[#allocation3] sm:$0xff] (!%p2319_p0) }
  0x1a   :  { %112 = vperm.xlu1 %2770, %v65_v22   ;;  %88 = vperm.xlu0 %2769, %v57_v23   ;;  %v469_v22 = vld [vmem:[#allocation3 + $0x8] sm:$0xff] (!%p2319_p0)  ;;  %v370_v23 = vld [vmem:[#allocation2 + $0x8] sm:$0xff] (!%p2319_p0) }
  0x1e   :  { %115 = vperm.xlu1 %2770, %v66_v24   ;;  %91 = vperm.xlu0 %2769, %v58_v25  }
  0x22   :  { %472 = vrot.lane.b32.xlu1 (!%p2319_p0), %v468_v21, %s2917_s3 }
  0x26   :  { %474 = vrot.lane.b32.xlu1 (!%p2319_p0), %v469_v22, %s2917_s3 }
  0x81   :  { %v74_v28 = vpop.permute.xlu1 %73  ;;  %v71_v29 = vpop.permute.xlu0 %70 }
  0x82   :  { %vm118_vm2 = vcmp.eq.s32.totalorder %v74_v28, %v3088_v27  ;;  %vm117_vm3 = vcmp.eq.s32.totalorder %v71_v29, %v3088_v27  ;;  %v2918_v28 = vmov (!%p2319_p0), 0  }
  0x83   :  { %v2288_v30 = vsel %vm118_vm2, 1.0, %v2916_v4  ;;  %v2287_v31 = vsel %vm117_vm3, 1.0, %v2916_v4  ;;  %2772 = vset.pattern.permute.xlu1 (!%p2319_p0), %v2918_v28  ;;  %2771 = vset.pattern.permute.xlu0 (!%p2319_p0), %v2918_v28 }
  0x84   :  { %2464 = vmatprep.mubr.msk.f32.mxu0 %vm167_vm1, %v2287_v31 }
  0x85   :  { %v98_v32 = vpop.permute.xlu1 %97  ;;  %2465 = vmatmul.mubr.msk.f32.vlgmr.msra.gmra.mrb[0].mxu0 %vm167_vm1, %v2288_v30  ;;  %v95_v33 = vpop.permute.xlu0 %94 }
  0x86   :  { %vm126_vm4 = vcmp.eq.s32.totalorder %v98_v32, %v3088_v27  ;;  %vm125_vm5 = vcmp.eq.s32.totalorder %v95_v33, %v3088_v27  ;;  %2632 = vmatpush3.bf16.msra.mxu0 (!%p2319_p0), %v2629_v18 }
  0x87   :  { %v2296_v34 = vsel %vm126_vm4, 1.0, %v2916_v4  ;;  %v2295_v35 = vsel %vm125_vm5, 1.0, %v2916_v4  ;;  %2634 = vmatprep.subr.bf16.mxu0 (!%p2319_p0), %v2633_v19  ;;  %vm533_vm4 = vcmp.eq.s32.totalorder (!%p2319_p0), %v3050_v12, 0 }
  0x88   :  { %2476 = vmatprep.mubr.msk.f32.mxu1 %vm167_vm1, %v2295_v35 }
  0x89   :  { %v101_v36 = vpop.permute.xlu1 %100  ;;  %2477 = vmatmul.mubr.msk.f32.vlgmr.msra.gmra.mrb[0].mxu1 %vm167_vm1, %v2296_v34  ;;  %v77_v37 = vpop.permute.xlu0 %76 }
  0x8a   :  { %vm127_vm6 = vcmp.eq.s32.totalorder %v101_v36, %v3088_v27  ;;  %vm119_vm7 = vcmp.eq.s32.totalorder %v77_v37, %v3088_v27  ;;  %2636 = vmatpush3.bf16.msra.mxu0 (!%p2319_p0), %v2633_v19 }
  0x8b   :  { %v2297_v38 = vsel %vm127_vm6, 1.0, %v2916_v4  ;;  %v2289_v39 = vsel %vm119_vm7, 1.0, %v2916_v4 }
  0x8c   :  { %2467 = vmatprep.mubr.msk.f32.mxu0 %vm167_vm1, %v2289_v39  ;;  %2479 = vmatprep.mubr.msk.f32.mxu1 %vm167_vm1, %v2297_v38 }
  0x8d   :  { %v104_v40 = vpop.permute.xlu1 %103  ;;  %v80_v41 = vpop.permute.xlu0 %79 }
  0x8e   :  { %vm128_vm8 = vcmp.eq.s32.totalorder %v104_v40, %v3088_v27  ;;  %vm120_vm9 = vcmp.eq.s32.totalorder %v80_v41, %v3088_v27 }
  0x8f   :  { %v2298_v42 = vsel %vm128_vm8, 1.0, %v2916_v4  ;;  %v2290_v43 = vsel %vm120_vm9, 1.0, %v2916_v4 }
  0x90   :  { %2468 = vmatmul.mubr.msk.f32.gmra.mrb[2].mxu0 %vm167_vm1, %v2290_v43  ;;  %2480 = vmatmul.mubr.msk.f32.gmra.mrb[2].mxu1 %vm167_vm1, %v2298_v42 }
  0x91   :  { %v107_v44 = vpop.permute.xlu1 %106  ;;  %v83_v45 = vpop.permute.xlu0 %82 }
  0x92   :  { %vm129_vm10 = vcmp.eq.s32.totalorder %v107_v44, %v3088_v27  ;;  %vm121_vm11 = vcmp.eq.s32.totalorder %v83_v45, %v3088_v27  ;;  %v537_v44 = vsel (!%p2319_p0), %vm533_vm4, 1, %v2918_v28 }
  0x93   :  { %v2299_v46 = vsel %vm129_vm10, 1.0, %v2916_v4  ;;  %v2291_v47 = vsel %vm121_vm11, 1.0, %v2916_v4 }
  0x94   :  { %2470 = vmatprep.mubr.msk.f32.mxu0 %vm167_vm1, %v2291_v47  ;;  %2482 = vmatprep.mubr.msk.f32.mxu1 %vm167_vm1, %v2299_v46 }
  0x95   :  { %v110_v48 = vpop.permute.xlu1 %109  ;;  %v86_v49 = vpop.permute.xlu0 %85 }
  0x96   :  { %vm130_vm12 = vcmp.eq.s32.totalorder %v110_v48, %v3088_v27  ;;  %vm122_vm13 = vcmp.eq.s32.totalorder %v86_v49, %v3088_v27 }
  0x97   :  { %v2300_v50 = vsel %vm130_vm12, 1.0, %v2916_v4  ;;  %v2292_v51 = vsel %vm122_vm13, 1.0, %v2916_v4 }
  0x98   :  { %2471 = vmatmul.mubr.msk.f32.gmra.mrb[4].mxu0 %vm167_vm1, %v2292_v51  ;;  %2483 = vmatmul.mubr.msk.f32.gmra.mrb[4].mxu1 %vm167_vm1, %v2300_v50 }
  0x99   :  { %v113_v52 = vpop.permute.xlu1 %112  ;;  %v89_v53 = vpop.permute.xlu0 %88 }
  0x9a   :  { %vm131_vm14 = vcmp.eq.s32.totalorder %v113_v52, %v3088_v27  ;;  %vm123_vm15 = vcmp.eq.s32.totalorder %v89_v53, %v3088_v27 }
  0x9b   :  { %v2301_v54 = vsel %vm131_vm14, 1.0, %v2916_v4  ;;  %v2293_v55 = vsel %vm123_vm15, 1.0, %v2916_v4 }
  0x9c   :  { %2473 = vmatprep.mubr.msk.f32.mxu0 %vm167_vm1, %v2293_v55  ;;  %2485 = vmatprep.mubr.msk.f32.mxu1 %vm167_vm1, %v2301_v54  ;;  %v534_v54 = vld [vmem:[#allocation4] sm:$0xff] (!%p2319_p0) }
  0x9d   :  { %v116_v56 = vpop.permute.xlu1 %115  ;;  %v92_v57 = vpop.permute.xlu0 %91 }
  0x9e   :  { %vm132_vm2 = vcmp.eq.s32.totalorder %v116_v56, %v3088_v27  ;;  %vm124_vm3 = vcmp.eq.s32.totalorder %v92_v57, %v3088_v27  ;;  %v535_v56 = vld [vmem:[#allocation4 + $0x8] sm:$0xff] (!%p2319_p0) }
  0x9f   :  { %v2302_v58 = vsel %vm132_vm2, 1.0, %v2916_v4  ;;  %v2294_v59 = vsel %vm124_vm3, 1.0, %v2916_v4 }
  0xa0   :  { %2474 = vmatmul.mubr.msk.f32.gmra.mrb[6].mxu0 %vm167_vm1, %v2294_v59  ;;  %2486 = vmatmul.mubr.msk.f32.gmra.mrb[6].mxu1 %vm167_vm1, %v2302_v58  ;;  %vm532_vm1 = vcmp.eq.s32.totalorder (!%p2319_p0), %v3048_v11, 0 }
  0xa1   :  { %2496 = vmatprep.mubr.msk.f32.mxu0 (!%p2319_p0), %vm39_vm0, %v369_v20  ;;  %v536_v42 = vsel (!%p2319_p0), %vm532_vm1, 1, %v2918_v28  ;;  %v473_v45 = vpop.permute.xlu1 (!%p2319_p0), %472 }
  0xa5   :  { %v475_v47 = vpop.permute.xlu1 (!%p2319_p0), %474 }
 0x158   :  { %v2466_v0 = vpop.f32.mrb[0].mxu0 }
 0x159   :  { %v282_v1 = vpop.f32.mrb[1].mxu0  ;;  %2497 = vmatmul.mubr.msk.f32.vlgmr.msra.gmra.mrb[0].mxu0 (!%p2319_p0), %vm39_vm0, %v370_v23 }
 0x15c   :  { %v3158_v2 = vpop.f32.mrb[0].mxu1 }
 0x15d   :  { %v3160_v3 = vpop.f32.mrb[1].mxu1 }
 0x163   :  { %v3162_v4 = vpop.f32.mrb[2].mxu0  ;;  %v3164_v5 = vpop.f32.mrb[2].mxu1 }
 0x164   :  { %v3166_v6 = vpop.f32.mrb[3].mxu0  ;;  %v3168_v7 = vpop.f32.mrb[3].mxu1 }
 0x16b   :  { %v3170_v8 = vpop.f32.mrb[4].mxu0  ;;  %v3172_v9 = vpop.f32.mrb[4].mxu1 }
 0x16c   :  { %v3174_v10 = vpop.f32.mrb[5].mxu0  ;;  %v3176_v13 = vpop.f32.mrb[5].mxu1 }
 0x16e   :  { %368 = sbr.rel (%p2319_p0) target bundleno = 1057 (0x421), region = 45 }
 0x173   :  { %v3178_v14 = vpop.f32.mrb[6].mxu0  ;;  %v3180_v15 = vpop.f32.mrb[6].mxu1 }
 0x174   :  { %v3182_v16 = vpop.f32.mrb[7].mxu0  ;;  %v3184_v17 = vpop.f32.mrb[7].mxu1 }
 0x22c   :  { %v2498_v24 = vpop.f32.mrb[0].mxu0 }
 0x22d   :  { %v443_v25 = vpop.f32.mrb[1].mxu0  ;;  %v453_v27 = vadd.f32 %v2498_v24, %v2466_v0 }
 0x22e   :  { %v452_v26 = vadd.f32 %v443_v25, %v282_v1 }
 0x22f   :  { %v2323_v32 = vmul.f32 -1.442695, %v453_v27 }
 0x230   :  { %2773 = vtanh.f32 %v452_v26  ;;  %v2322_v31 = vmul.f32 -1.442695, %v452_v26 }
 0x231   :  { %2775 = vtanh.f32 %v453_v27 }
 0x232   :  { %2777 = vpow2.f32 %v2322_v31 }
 0x233   :  { %2779 = vpow2.f32 %v2323_v32 }
 0x23a   :  { %v2774_v29 = vpop.eup %2773 }
 0x23b   :  { %482 = vrot.lane.b32.xlu0 %v2774_v29, %s2917_s3  ;;  %v2776_v30 = vpop.eup %2775 }
 0x23c   :  { %v2778_v33 = vpop.eup %2777 }
 0x23d   :  { %v460_v34 = vadd.f32 1.0, %v2778_v33  ;;  %v2780_v35 = vpop.eup %2779 }
 0x23e   :  { %v461_v36 = vadd.f32 1.0, %v2780_v35 }
 0x23f   :  { %484 = vrot.lane.b32.xlu0 %v2776_v30, %s2917_s3  ;;  %2781 = vrcp.f32 %v460_v34 }
 0x240   :  { %2783 = vrcp.f32 %v461_v36 }
 0x249   :  { %v2782_v37 = vpop.eup %2781 }
 0x24a   :  { %v2784_v40 = vpop.eup %2783  ;;  %v478_v46 = vmul.f32 %v2782_v37, %v473_v45 }
 0x24b   :  { %v479_v50 = vmul.f32 %v2784_v40, %v475_v47 }
 0x2ad   :  { %v483_v38 = vpop.permute.xlu0 %482 }
 0x2ae   :  { %v488_v39 = vmul.f32 %v2782_v37, %v483_v38 }
 0x2b0   :  { %492 = vrot.lane.b32.xlu0 %v488_v39, %s2917_s3 }
 0x2b1   :  { %v485_v41 = vpop.permute.xlu0 %484 }
 0x2b2   :  { %v489_v43 = vmul.f32 %v2784_v40, %v485_v41 }
 0x2b4   :  { %494 = vrot.lane.b32.xlu1 %v489_v43, %s2917_s3  ;;  %539 = vperm.xlu0 %2771, %v536_v42  }
 0x2b8   :  { %542 = vperm.xlu1 %2772, %v537_v44  }
 0x322   :  { %v493_v48 = vpop.permute.xlu0 %492 }
 0x323   :  { %v498_v49 = vadd.f32 %v493_v48, %v478_v46 }
 0x325   :  { %2785 = vtanh.f32 %v498_v49 }
 0x326   :  { %v495_v51 = vpop.permute.xlu1 %494 }
 0x327   :  { %v499_v52 = vadd.f32 %v495_v51, %v479_v50 }
 0x329   :  { %2787 = vtanh.f32 %v499_v52 }
 0x32f   :  { %v2786_v53 = vpop.eup %2785 }
 0x330   :  { %504 = vrot.lane.b32.xlu1 %v2786_v53, %s2917_s3 }
 0x333   :  { %v2788_v55 = vpop.eup %2787  ;;  %v540_v58 = vpop.permute.xlu0 %539 }
 0x334   :  { %506 = vrot.lane.b32.xlu0 %v2788_v55, %s2917_s3  ;;  %548 = vrot.lane.b32.xlu1 %v534_v54, %s2919_s23  ;;  %vm544_vm5 = vcmp.eq.s32.totalorder %v540_v58, 1 }
 0x337   :  { %v543_v57 = vpop.permute.xlu1 %542 }
 0x338   :  { %550 = vrot.lane.b32.xlu0 %v535_v56, %s2919_s23  ;;  %514 = vrot.lane.b32.xlu1 %v498_v49, %s2920_s24  ;;  %vm545_vm6 = vcmp.eq.s32.totalorder %v543_v57, 1 }
 0x33c   :  { %516 = vrot.lane.b32.xlu0 %v499_v52, %s2920_s24 }
 0x3a2   :  { %v505_v59 = vpop.permute.xlu1 %504 }
 0x3a3   :  { %v510_v0 = vmul.f32 %v2782_v37, %v505_v59 }
 0x3a5   :  { %524 = vrot.lane.b32.xlu1 %v510_v0, %s2919_s23 }
 0x3a6   :  { %v507_v1 = vpop.permute.xlu0 %506  ;;  %v549_v18 = vpop.permute.xlu1 %548 }
 0x3a7   :  { %v511_v19 = vmul.f32 %v2784_v40, %v507_v1  ;;  %v554_v20 = vsel %vm544_vm5, %v510_v0, %v549_v18 }
 0x3a9   :  { %526 = vrot.lane.b32.xlu0 %v511_v19, %s2919_s23  ;;  %558 = vrot.lane.b32.xlu1 %v554_v20, %s2919_s23 }
 0x3aa   :  { %v551_v21 = vpop.permute.xlu0 %550  ;;  %v515_v22 = vpop.permute.xlu1 %514 }
 0x3ab   :  { %520 = vst.msk [vmem:[#allocation3] sm:$0xff] %vm39_vm0, %v515_v22  ;;  %v555_v23 = vsel %vm545_vm6, %v511_v19, %v551_v21 }
 0x3ad   :  { %560 = vrot.lane.b32.xlu0 %v555_v23, %s2919_s23 }
 0x3ae   :  { %v517_v24 = vpop.permute.xlu0 %516 }
 0x3af   :  { %521 = vst.msk [vmem:[#allocation3 + $0x8] sm:$0xff] %vm39_vm0, %v517_v24 }
 0x417   :  { %v525_v25 = vpop.permute.xlu1 %524 }
 0x418   :  { %530 = vst.msk [vmem:[#allocation2] sm:$0xff] %vm39_vm0, %v525_v25 }
 0x41b   :  { %v527_v26 = vpop.permute.xlu0 %526  ;;  %v559_v27 = vpop.permute.xlu1 %558 }
 0x41c   :  { %531 = vst.msk [vmem:[#allocation2 + $0x8] sm:$0xff] %vm39_vm0, %v527_v26  ;;  %564 = vst.msk [vmem:[#allocation4] sm:$0xff] %vm39_vm0, %v559_v27 }
 0x41f   :  { %v561_v28 = vpop.permute.xlu0 %560 }
 0x420   :  { %565 = vst.msk [vmem:[#allocation4 + $0x8] sm:$0xff] %vm39_vm0, %v561_v28 }
 0x421 PF:  { %p2324_p1 = scmp.le.s32.totalorder %s3477_s0, 1 }
 0x422   :  { %v2637_v29 = vpack.c.bf16 (!%p2324_p1), %v3146_v61, %v3141_v60  ;;  %v2641_v30 = vpack.c.bf16 (!%p2324_p1), %v3156_v63, %v3151_v62  ;;  %v570_v31 = vld [vmem:[#allocation2] sm:$0xff] (!%p2324_p1)  ;;  %v669_v32 = vld [vmem:[#allocation3] sm:$0xff] (!%p2324_p1)  ;;  %s2921_s27 = smov (!%p2324_p1), 32   ;;  %v670_v33 = vld [vmem:[#allocation3 + $0x8] sm:$0xff] (!%p2324_p1)  ;;  %v2922_v39 = vmov (!%p2324_p1), 0   ;;  %vm733_vm7 = vcmp.eq.s32.totalorder (!%p2324_p1), %v3048_v11, 1 }
 0x423   :  { %569 = sbr.rel (%p2324_p1) target bundleno = 1780 (0x6f4), region = 49  ;;  %2507 = vmatprep.mubr.msk.f32.mxu0 (!%p2324_p1), %vm39_vm0, %v570_v31  ;;  %673 = vrot.lane.b32.xlu1 (!%p2324_p1), %v669_v32, %s2921_s27  ;;  %v571_v34 = vld [vmem:[#allocation2 + $0x8] sm:$0xff] (!%p2324_p1)  ;;  %v737_v51 = vsel (!%p2324_p1), %vm733_vm7, 1, %v2922_v39  ;;  %vm734_vm8 = vcmp.eq.s32.totalorder (!%p2324_p1), %v3050_v12, 1  ;;  %v735_v19 = vld [vmem:[#allocation4] sm:$0xff] (!%p2324_p1)  ;;  %s2923_s28 = smov (!%p2324_p1), 64  }
 0x424   :  { %2638 = vmatprep.subr.bf16.mxu0 (!%p2324_p1), %v2637_v29  ;;  %2790 = vset.pattern.permute.xlu1 (!%p2324_p1), %v2922_v39  ;;  %v738_v53 = vsel (!%p2324_p1), %vm734_vm8, 1, %v2922_v39  ;;  %s2924_s29 = smov (!%p2324_p1), 96  }
 0x425   :  { %2640 = vmatpush3.bf16.msra.mxu0 (!%p2324_p1), %v2637_v29  ;;  %2789 = vset.pattern.permute.xlu0 (!%p2324_p1), %v2922_v39 }
 0x426   :  { %2642 = vmatprep.subr.bf16.mxu0 (!%p2324_p1), %v2641_v30 }
 0x427   :  { %675 = vrot.lane.b32.xlu1 (!%p2324_p1), %v670_v33, %s2921_s27  ;;  %v736_v21 = vld [vmem:[#allocation4 + $0x8] sm:$0xff] (!%p2324_p1) }
 0x429   :  { %2644 = vmatpush3.bf16.msra.mxu0 (!%p2324_p1), %v2641_v30 }
 0x42c   :  { %2508 = vmatmul.mubr.msk.f32.vlgmr.msra.gmra.mrb[0].mxu0 %vm39_vm0, %v571_v34 }
 0x495   :  { %v674_v54 = vpop.permute.xlu1 %673 }
 0x499   :  { %v676_v56 = vpop.permute.xlu1 %675 }
 0x4ff   :  { %v2509_v35 = vpop.f32.mrb[0].mxu0 }
 0x500   :  { %v644_v36 = vpop.f32.mrb[1].mxu0  ;;  %v654_v38 = vadd.f32 %v2509_v35, %v3162_v4 }
 0x501   :  { %v653_v37 = vadd.f32 %v644_v36, %v3166_v6 }
 0x502   :  { %v2328_v43 = vmul.f32 -1.442695, %v654_v38 }
 0x503   :  { %2791 = vtanh.f32 %v653_v37  ;;  %v2327_v42 = vmul.f32 -1.442695, %v653_v37 }
 0x504   :  { %2793 = vtanh.f32 %v654_v38 }
 0x505   :  { %2795 = vpow2.f32 %v2327_v42 }
 0x506   :  { %2797 = vpow2.f32 %v2328_v43 }
 0x50d   :  { %v2792_v40 = vpop.eup %2791 }
 0x50e   :  { %683 = vrot.lane.b32.xlu0 %v2792_v40, %s2921_s27  ;;  %v2794_v41 = vpop.eup %2793 }
 0x50f   :  { %v2796_v44 = vpop.eup %2795 }
 0x510   :  { %v661_v45 = vadd.f32 1.0, %v2796_v44  ;;  %v2798_v6 = vpop.eup %2797 }
 0x511   :  { %v662_v46 = vadd.f32 1.0, %v2798_v6 }
 0x512   :  { %685 = vrot.lane.b32.xlu0 %v2794_v41, %s2921_s27  ;;  %2799 = vrcp.f32 %v661_v45 }
 0x513   :  { %2801 = vrcp.f32 %v662_v46 }
 0x51c   :  { %v2800_v4 = vpop.eup %2799 }
 0x51d   :  { %v2802_v49 = vpop.eup %2801  ;;  %v679_v55 = vmul.f32 %v2800_v4, %v674_v54 }
 0x51e   :  { %v680_v59 = vmul.f32 %v2802_v49, %v676_v56 }
 0x580   :  { %v684_v47 = vpop.permute.xlu0 %683 }
 0x581   :  { %v689_v48 = vmul.f32 %v2800_v4, %v684_v47 }
 0x583   :  { %693 = vrot.lane.b32.xlu0 %v689_v48, %s2921_s27 }
 0x584   :  { %v686_v50 = vpop.permute.xlu0 %685 }
 0x585   :  { %v690_v52 = vmul.f32 %v2802_v49, %v686_v50 }
 0x587   :  { %695 = vrot.lane.b32.xlu1 %v690_v52, %s2921_s27  ;;  %740 = vperm.xlu0 %2789, %v737_v51  }
 0x58b   :  { %743 = vperm.xlu1 %2790, %v738_v53  }
 0x5f5   :  { %v694_v57 = vpop.permute.xlu0 %693 }
 0x5f6   :  { %v699_v58 = vadd.f32 %v694_v57, %v679_v55 }
 0x5f8   :  { %2803 = vtanh.f32 %v699_v58 }
 0x5f9   :  { %v696_v0 = vpop.permute.xlu1 %695 }
 0x5fa   :  { %v700_v1 = vadd.f32 %v696_v0, %v680_v59 }
 0x5fc   :  { %2805 = vtanh.f32 %v700_v1 }
 0x602   :  { %v2804_v18 = vpop.eup %2803 }
 0x603   :  { %705 = vrot.lane.b32.xlu1 %v2804_v18, %s2921_s27 }
 0x606   :  { %v2806_v20 = vpop.eup %2805  ;;  %v741_v23 = vpop.permute.xlu0 %740 }
 0x607   :  { %707 = vrot.lane.b32.xlu0 %v2806_v20, %s2921_s27  ;;  %749 = vrot.lane.b32.xlu1 %v735_v19, %s2923_s28  ;;  %vm745_vm9 = vcmp.eq.s32.totalorder %v741_v23, 1 }
 0x60a   :  { %v744_v22 = vpop.permute.xlu1 %743 }
 0x60b   :  { %751 = vrot.lane.b32.xlu0 %v736_v21, %s2923_s28  ;;  %715 = vrot.lane.b32.xlu1 %v699_v58, %s2924_s29  ;;  %vm746_vm10 = vcmp.eq.s32.totalorder %v744_v22, 1 }
 0x60f   :  { %717 = vrot.lane.b32.xlu0 %v700_v1, %s2924_s29 }
 0x675   :  { %v706_v24 = vpop.permute.xlu1 %705 }
 0x676   :  { %v711_v25 = vmul.f32 %v2800_v4, %v706_v24 }
 0x678   :  { %725 = vrot.lane.b32.xlu1 %v711_v25, %s2923_s28 }
 0x679   :  { %v708_v26 = vpop.permute.xlu0 %707  ;;  %v750_v27 = vpop.permute.xlu1 %749 }
 0x67a   :  { %v712_v28 = vmul.f32 %v2802_v49, %v708_v26  ;;  %v755_v29 = vsel %vm745_vm9, %v711_v25, %v750_v27 }
 0x67c   :  { %727 = vrot.lane.b32.xlu0 %v712_v28, %s2923_s28  ;;  %759 = vrot.lane.b32.xlu1 %v755_v29, %s2923_s28 }
 0x67d   :  { %v752_v30 = vpop.permute.xlu0 %751  ;;  %v716_v31 = vpop.permute.xlu1 %715 }
 0x67e   :  { %721 = vst.msk [vmem:[#allocation3] sm:$0xff] %vm39_vm0, %v716_v31  ;;  %v756_v32 = vsel %vm746_vm10, %v712_v28, %v752_v30 }
 0x680   :  { %761 = vrot.lane.b32.xlu0 %v756_v32, %s2923_s28 }
 0x681   :  { %v718_v33 = vpop.permute.xlu0 %717 }
 0x682   :  { %722 = vst.msk [vmem:[#allocation3 + $0x8] sm:$0xff] %vm39_vm0, %v718_v33 }
 0x6ea   :  { %v726_v34 = vpop.permute.xlu1 %725 }
 0x6eb   :  { %731 = vst.msk [vmem:[#allocation2] sm:$0xff] %vm39_vm0, %v726_v34 }
 0x6ee   :  { %v728_v35 = vpop.permute.xlu0 %727  ;;  %v760_v36 = vpop.permute.xlu1 %759 }
 0x6ef   :  { %732 = vst.msk [vmem:[#allocation2 + $0x8] sm:$0xff] %vm39_vm0, %v728_v35  ;;  %765 = vst.msk [vmem:[#allocation4] sm:$0xff] %vm39_vm0, %v760_v36 }
 0x6f2   :  { %v762_v37 = vpop.permute.xlu0 %761 }
 0x6f3   :  { %766 = vst.msk [vmem:[#allocation4 + $0x8] sm:$0xff] %vm39_vm0, %v762_v37 }
 0x6f4 PF:  { %p2329_p2 = scmp.le.s32.totalorder %s3477_s0, 2 }
 0x6f5   :  { %v2645_v38 = vpack.c.bf16 (!%p2329_p2), %v3146_v61, %v3141_v60  ;;  %v2649_v39 = vpack.c.bf16 (!%p2329_p2), %v3156_v63, %v3151_v62  ;;  %v771_v40 = vld [vmem:[#allocation2] sm:$0xff] (!%p2329_p2)  ;;  %v870_v41 = vld [vmem:[#allocation3] sm:$0xff] (!%p2329_p2)  ;;  %s2925_s13 = smov (!%p2329_p2), 32   ;;  %v871_v42 = vld [vmem:[#allocation3 + $0x8] sm:$0xff] (!%p2329_p2)  ;;  %v2926_v4 = vmov (!%p2329_p2), 0   ;;  %vm934_vm11 = vcmp.eq.s32.totalorder (!%p2329_p2), %v3048_v11, 2 }
 0x6f6   :  { %770 = sbr.rel (%p2329_p2) target bundleno = 2503 (0x9c7), region = 53  ;;  %2518 = vmatprep.mubr.msk.f32.mxu0 (!%p2329_p2), %vm39_vm0, %v771_v40  ;;  %874 = vrot.lane.b32.xlu1 (!%p2329_p2), %v870_v41, %s2925_s13  ;;  %v772_v43 = vld [vmem:[#allocation2 + $0x8] sm:$0xff] (!%p2329_p2)  ;;  %v938_v58 = vsel (!%p2329_p2), %vm934_vm11, 1, %v2926_v4  ;;  %vm935_vm12 = vcmp.eq.s32.totalorder (!%p2329_p2), %v3050_v12, 2  ;;  %v936_v26 = vld [vmem:[#allocation4] sm:$0xff] (!%p2329_p2)  ;;  %s2927_s14 = smov (!%p2329_p2), 64  }
 0x6f7   :  { %2646 = vmatprep.subr.bf16.mxu0 (!%p2329_p2), %v2645_v38  ;;  %2808 = vset.pattern.permute.xlu1 (!%p2329_p2), %v2926_v4  ;;  %v939_v0 = vsel (!%p2329_p2), %vm935_vm12, 1, %v2926_v4  ;;  %s2928_s15 = smov (!%p2329_p2), 96  }
 0x6f8   :  { %2648 = vmatpush3.bf16.msra.mxu0 (!%p2329_p2), %v2645_v38  ;;  %2807 = vset.pattern.permute.xlu0 (!%p2329_p2), %v2926_v4 }
 0x6f9   :  { %2650 = vmatprep.subr.bf16.mxu0 (!%p2329_p2), %v2649_v39 }
 0x6fa   :  { %876 = vrot.lane.b32.xlu1 (!%p2329_p2), %v871_v42, %s2925_s13  ;;  %v937_v28 = vld [vmem:[#allocation4 + $0x8] sm:$0xff] (!%p2329_p2) }
 0x6fc   :  { %2652 = vmatpush3.bf16.msra.mxu0 (!%p2329_p2), %v2649_v39 }
 0x6ff   :  { %2519 = vmatmul.mubr.msk.f32.vlgmr.msra.gmra.mrb[0].mxu0 %vm39_vm0, %v772_v43 }
 0x768   :  { %v875_v1 = vpop.permute.xlu1 %874 }
 0x76c   :  { %v877_v19 = vpop.permute.xlu1 %876 }
 0x7d2   :  { %v2520_v44 = vpop.f32.mrb[0].mxu0 }
 0x7d3   :  { %v845_v45 = vpop.f32.mrb[1].mxu0  ;;  %v855_v46 = vadd.f32 %v2520_v44, %v3170_v8 }
 0x7d4   :  { %v854_v6 = vadd.f32 %v845_v45, %v3174_v10 }
 0x7d5   :  { %v2333_v50 = vmul.f32 -1.442695, %v855_v46 }
 0x7d6   :  { %2809 = vtanh.f32 %v854_v6  ;;  %v2332_v49 = vmul.f32 -1.442695, %v854_v6 }
 0x7d7   :  { %2811 = vtanh.f32 %v855_v46 }
 0x7d8   :  { %2813 = vpow2.f32 %v2332_v49 }
 0x7d9   :  { %2815 = vpow2.f32 %v2333_v50 }
 0x7e0   :  { %v2810_v47 = vpop.eup %2809 }
 0x7e1   :  { %884 = vrot.lane.b32.xlu0 %v2810_v47, %s2925_s13  ;;  %v2812_v48 = vpop.eup %2811 }
 0x7e2   :  { %v2814_v51 = vpop.eup %2813 }
 0x7e3   :  { %v862_v52 = vadd.f32 1.0, %v2814_v51  ;;  %v2816_v10 = vpop.eup %2815 }
 0x7e4   :  { %v863_v53 = vadd.f32 1.0, %v2816_v10 }
 0x7e5   :  { %886 = vrot.lane.b32.xlu0 %v2812_v48, %s2925_s13  ;;  %2817 = vrcp.f32 %v862_v52 }
 0x7e6   :  { %2819 = vrcp.f32 %v863_v53 }
 0x7ef   :  { %v2818_v8 = vpop.eup %2817 }
 0x7f0   :  { %v2820_v56 = vpop.eup %2819  ;;  %v880_v18 = vmul.f32 %v2818_v8, %v875_v1 }
 0x7f1   :  { %v881_v22 = vmul.f32 %v2820_v56, %v877_v19 }
 0x853   :  { %v885_v54 = vpop.permute.xlu0 %884 }
 0x854   :  { %v890_v55 = vmul.f32 %v2818_v8, %v885_v54 }
 0x856   :  { %894 = vrot.lane.b32.xlu0 %v890_v55, %s2925_s13 }
 0x857   :  { %v887_v57 = vpop.permute.xlu0 %886 }
 0x858   :  { %v891_v59 = vmul.f32 %v2820_v56, %v887_v57 }
 0x85a   :  { %896 = vrot.lane.b32.xlu1 %v891_v59, %s2925_s13  ;;  %941 = vperm.xlu0 %2807, %v938_v58  }
 0x85e   :  { %944 = vperm.xlu1 %2808, %v939_v0  }
 0x8c8   :  { %v895_v20 = vpop.permute.xlu0 %894 }
 0x8c9   :  { %v900_v21 = vadd.f32 %v895_v20, %v880_v18 }
 0x8cb   :  { %2821 = vtanh.f32 %v900_v21 }
 0x8cc   :  { %v897_v23 = vpop.permute.xlu1 %896 }
 0x8cd   :  { %v901_v24 = vadd.f32 %v897_v23, %v881_v22 }
 0x8cf   :  { %2823 = vtanh.f32 %v901_v24 }
 0x8d5   :  { %v2822_v25 = vpop.eup %2821 }
 0x8d6   :  { %906 = vrot.lane.b32.xlu1 %v2822_v25, %s2925_s13 }
 0x8d9   :  { %v2824_v27 = vpop.eup %2823  ;;  %v942_v30 = vpop.permute.xlu0 %941 }
 0x8da   :  { %908 = vrot.lane.b32.xlu0 %v2824_v27, %s2925_s13  ;;  %950 = vrot.lane.b32.xlu1 %v936_v26, %s2927_s14  ;;  %vm946_vm13 = vcmp.eq.s32.totalorder %v942_v30, 1 }
 0x8dd   :  { %v945_v29 = vpop.permute.xlu1 %944 }
 0x8de   :  { %952 = vrot.lane.b32.xlu0 %v937_v28, %s2927_s14  ;;  %916 = vrot.lane.b32.xlu1 %v900_v21, %s2928_s15  ;;  %vm947_vm14 = vcmp.eq.s32.totalorder %v945_v29, 1 }
 0x8e2   :  { %918 = vrot.lane.b32.xlu0 %v901_v24, %s2928_s15 }
 0x948   :  { %v907_v31 = vpop.permute.xlu1 %906 }
 0x949   :  { %v912_v32 = vmul.f32 %v2818_v8, %v907_v31 }
 0x94b   :  { %926 = vrot.lane.b32.xlu1 %v912_v32, %s2927_s14 }
 0x94c   :  { %v909_v33 = vpop.permute.xlu0 %908  ;;  %v951_v34 = vpop.permute.xlu1 %950 }
 0x94d   :  { %v913_v35 = vmul.f32 %v2820_v56, %v909_v33  ;;  %v956_v36 = vsel %vm946_vm13, %v912_v32, %v951_v34 }
 0x94f   :  { %928 = vrot.lane.b32.xlu0 %v913_v35, %s2927_s14  ;;  %960 = vrot.lane.b32.xlu1 %v956_v36, %s2927_s14 }
 0x950   :  { %v953_v37 = vpop.permute.xlu0 %952  ;;  %v917_v38 = vpop.permute.xlu1 %916 }
 0x951   :  { %922 = vst.msk [vmem:[#allocation3] sm:$0xff] %vm39_vm0, %v917_v38  ;;  %v957_v39 = vsel %vm947_vm14, %v913_v35, %v953_v37 }
 0x953   :  { %962 = vrot.lane.b32.xlu0 %v957_v39, %s2927_s14 }
 0x954   :  { %v919_v40 = vpop.permute.xlu0 %918 }
 0x955   :  { %923 = vst.msk [vmem:[#allocation3 + $0x8] sm:$0xff] %vm39_vm0, %v919_v40 }
 0x9bd   :  { %v927_v41 = vpop.permute.xlu1 %926 }
 0x9be   :  { %932 = vst.msk [vmem:[#allocation2] sm:$0xff] %vm39_vm0, %v927_v41 }
 0x9c1   :  { %v929_v42 = vpop.permute.xlu0 %928  ;;  %v961_v43 = vpop.permute.xlu1 %960 }
 0x9c2   :  { %933 = vst.msk [vmem:[#allocation2 + $0x8] sm:$0xff] %vm39_vm0, %v929_v42  ;;  %966 = vst.msk [vmem:[#allocation4] sm:$0xff] %vm39_vm0, %v961_v43 }
 0x9c5   :  { %v963_v44 = vpop.permute.xlu0 %962 }
 0x9c6   :  { %967 = vst.msk [vmem:[#allocation4 + $0x8] sm:$0xff] %vm39_vm0, %v963_v44 }
 0x9c7 PF:  { %p2334_p3 = scmp.le.s32.totalorder %s3477_s0, 3 }
 0x9c8   :  { %v2653_v45 = vpack.c.bf16 (!%p2334_p3), %v3146_v61, %v3141_v60  ;;  %v2657_v6 = vpack.c.bf16 (!%p2334_p3), %v3156_v63, %v3151_v62  ;;  %v972_v46 = vld [vmem:[#allocation2] sm:$0xff] (!%p2334_p3)  ;;  %v1071_v4 = vld [vmem:[#allocation3] sm:$0xff] (!%p2334_p3)  ;;  %s2929_s17 = smov (!%p2334_p3), 32   ;;  %v1072_v47 = vld [vmem:[#allocation3 + $0x8] sm:$0xff] (!%p2334_p3)  ;;  %v2930_v10 = vmov (!%p2334_p3), 0   ;;  %vm1135_vm15 = vcmp.eq.s32.totalorder (!%p2334_p3), %v3048_v11, 3 }
 0x9c9   :  { %971 = sbr.rel (%p2334_p3) target bundleno = 3226 (0xc9a), region = 57  ;;  %2529 = vmatprep.mubr.msk.f32.mxu0 (!%p2334_p3), %vm39_vm0, %v972_v46  ;;  %1075 = vrot.lane.b32.xlu1 (!%p2334_p3), %v1071_v4, %s2929_s17  ;;  %v973_v48 = vld [vmem:[#allocation2 + $0x8] sm:$0xff] (!%p2334_p3)  ;;  %v1139_v19 = vsel (!%p2334_p3), %vm1135_vm15, 1, %v2930_v10  ;;  %vm1136_vm2 = vcmp.eq.s32.totalorder (!%p2334_p3), %v3050_v12, 3  ;;  %v1137_v31 = vld [vmem:[#allocation4] sm:$0xff] (!%p2334_p3)  ;;  %s2931_s18 = smov (!%p2334_p3), 64  }
 0x9ca   :  { %2654 = vmatprep.subr.bf16.mxu0 (!%p2334_p3), %v2653_v45  ;;  %2826 = vset.pattern.permute.xlu1 (!%p2334_p3), %v2930_v10  ;;  %v1140_v21 = vsel (!%p2334_p3), %vm1136_vm2, 1, %v2930_v10  ;;  %s2932_s2 = smov (!%p2334_p3), 96  }
 0x9cb   :  { %2656 = vmatpush3.bf16.msra.mxu0 (!%p2334_p3), %v2653_v45  ;;  %2825 = vset.pattern.permute.xlu0 (!%p2334_p3), %v2930_v10 }
 0x9cc   :  { %2658 = vmatprep.subr.bf16.mxu0 (!%p2334_p3), %v2657_v6 }
 0x9cd   :  { %1077 = vrot.lane.b32.xlu1 (!%p2334_p3), %v1072_v47, %s2929_s17  ;;  %v1138_v33 = vld [vmem:[#allocation4 + $0x8] sm:$0xff] (!%p2334_p3) }
 0x9cf   :  { %2660 = vmatpush3.bf16.msra.mxu0 (!%p2334_p3), %v2657_v6 }
 0x9d2   :  { %2530 = vmatmul.mubr.msk.f32.vlgmr.msra.gmra.mrb[0].mxu0 %vm39_vm0, %v973_v48 }
 0xa3b   :  { %v1076_v22 = vpop.permute.xlu1 %1075 }
 0xa3f   :  { %v1078_v24 = vpop.permute.xlu1 %1077 }
 0xaa5   :  { %v2531_v49 = vpop.f32.mrb[0].mxu0 }
 0xaa6   :  { %v1046_v50 = vpop.f32.mrb[1].mxu0  ;;  %v1056_v52 = vadd.f32 %v2531_v49, %v3178_v14 }
 0xaa7   :  { %v1055_v51 = vadd.f32 %v1046_v50, %v3182_v16 }
 0xaa8   :  { %v2338_v55 = vmul.f32 -1.442695, %v1056_v52 }
 0xaa9   :  { %2827 = vtanh.f32 %v1055_v51  ;;  %v2337_v54 = vmul.f32 -1.442695, %v1055_v51 }
 0xaaa   :  { %2829 = vtanh.f32 %v1056_v52 }
 0xaab   :  { %2831 = vpow2.f32 %v2337_v54 }
 0xaac   :  { %2833 = vpow2.f32 %v2338_v55 }
 0xab3   :  { %v2828_v53 = vpop.eup %2827 }
 0xab4   :  { %1085 = vrot.lane.b32.xlu0 %v2828_v53, %s2929_s17  ;;  %v2830_v8 = vpop.eup %2829 }
 0xab5   :  { %v2832_v56 = vpop.eup %2831 }
 0xab6   :  { %v1063_v57 = vadd.f32 1.0, %v2832_v56  ;;  %v2834_v16 = vpop.eup %2833 }
 0xab7   :  { %v1064_v58 = vadd.f32 1.0, %v2834_v16 }
 0xab8   :  { %1087 = vrot.lane.b32.xlu0 %v2830_v8, %s2929_s17  ;;  %2835 = vrcp.f32 %v1063_v57 }
 0xab9   :  { %2837 = vrcp.f32 %v1064_v58 }
 0xac2   :  { %v2836_v14 = vpop.eup %2835 }
 0xac3   :  { %v2838_v1 = vpop.eup %2837  ;;  %v1081_v23 = vmul.f32 %v2836_v14, %v1076_v22 }
 0xac4   :  { %v1082_v27 = vmul.f32 %v2838_v1, %v1078_v24 }
 0xb26   :  { %v1086_v59 = vpop.permute.xlu0 %1085 }
 0xb27   :  { %v1091_v0 = vmul.f32 %v2836_v14, %v1086_v59 }
 0xb29   :  { %1095 = vrot.lane.b32.xlu0 %v1091_v0, %s2929_s17 }
 0xb2a   :  { %v1088_v18 = vpop.permute.xlu0 %1087 }
 0xb2b   :  { %v1092_v20 = vmul.f32 %v2838_v1, %v1088_v18 }
 0xb2d   :  { %1097 = vrot.lane.b32.xlu1 %v1092_v20, %s2929_s17  ;;  %1142 = vperm.xlu0 %2825, %v1139_v19  }
 0xb31   :  { %1145 = vperm.xlu1 %2826, %v1140_v21  }
 0xb9b   :  { %v1096_v25 = vpop.permute.xlu0 %1095 }
 0xb9c   :  { %v1101_v26 = vadd.f32 %v1096_v25, %v1081_v23 }
 0xb9e   :  { %2839 = vtanh.f32 %v1101_v26 }
 0xb9f   :  { %v1098_v28 = vpop.permute.xlu1 %1097 }
 0xba0   :  { %v1102_v29 = vadd.f32 %v1098_v28, %v1082_v27 }
 0xba2   :  { %2841 = vtanh.f32 %v1102_v29 }
 0xba8   :  { %v2840_v30 = vpop.eup %2839 }
 0xba9   :  { %1107 = vrot.lane.b32.xlu1 %v2840_v30, %s2929_s17 }
 0xbac   :  { %v2842_v32 = vpop.eup %2841  ;;  %v1143_v35 = vpop.permute.xlu0 %1142 }
 0xbad   :  { %1109 = vrot.lane.b32.xlu0 %v2842_v32, %s2929_s17  ;;  %1151 = vrot.lane.b32.xlu1 %v1137_v31, %s2931_s18  ;;  %vm1147_vm3 = vcmp.eq.s32.totalorder %v1143_v35, 1 }
 0xbb0   :  { %v1146_v34 = vpop.permute.xlu1 %1145 }
 0xbb1   :  { %1153 = vrot.lane.b32.xlu0 %v1138_v33, %s2931_s18  ;;  %1117 = vrot.lane.b32.xlu1 %v1101_v26, %s2932_s2  ;;  %vm1148_vm1 = vcmp.eq.s32.totalorder %v1146_v34, 1 }
 0xbb5   :  { %1119 = vrot.lane.b32.xlu0 %v1102_v29, %s2932_s2 }
 0xc1b   :  { %v1108_v36 = vpop.permute.xlu1 %1107 }
 0xc1c   :  { %v1113_v37 = vmul.f32 %v2836_v14, %v1108_v36 }
 0xc1e   :  { %1127 = vrot.lane.b32.xlu1 %v1113_v37, %s2931_s18 }
 0xc1f   :  { %v1110_v38 = vpop.permute.xlu0 %1109  ;;  %v1152_v39 = vpop.permute.xlu1 %1151 }
 0xc20   :  { %v1114_v40 = vmul.f32 %v2838_v1, %v1110_v38  ;;  %v1157_v41 = vsel %vm1147_vm3, %v1113_v37, %v1152_v39 }
 0xc22   :  { %1129 = vrot.lane.b32.xlu0 %v1114_v40, %s2931_s18  ;;  %1161 = vrot.lane.b32.xlu1 %v1157_v41, %s2931_s18 }
 0xc23   :  { %v1154_v42 = vpop.permute.xlu0 %1153  ;;  %v1118_v43 = vpop.permute.xlu1 %1117 }
 0xc24   :  { %1123 = vst.msk [vmem:[#allocation3] sm:$0xff] %vm39_vm0, %v1118_v43  ;;  %v1158_v44 = vsel %vm1148_vm1, %v1114_v40, %v1154_v42 }
 0xc26   :  { %1163 = vrot.lane.b32.xlu0 %v1158_v44, %s2931_s18 }
 0xc27   :  { %v1120_v45 = vpop.permute.xlu0 %1119 }
 0xc28   :  { %1124 = vst.msk [vmem:[#allocation3 + $0x8] sm:$0xff] %vm39_vm0, %v1120_v45 }
 0xc90   :  { %v1128_v6 = vpop.permute.xlu1 %1127 }
 0xc91   :  { %1133 = vst.msk [vmem:[#allocation2] sm:$0xff] %vm39_vm0, %v1128_v6 }
 0xc94   :  { %v1130_v46 = vpop.permute.xlu0 %1129  ;;  %v1162_v4 = vpop.permute.xlu1 %1161 }
 0xc95   :  { %1134 = vst.msk [vmem:[#allocation2 + $0x8] sm:$0xff] %vm39_vm0, %v1130_v46  ;;  %1167 = vst.msk [vmem:[#allocation4] sm:$0xff] %vm39_vm0, %v1162_v4 }
 0xc98   :  { %v1164_v47 = vpop.permute.xlu0 %1163 }
 0xc99   :  { %1168 = vst.msk [vmem:[#allocation4 + $0x8] sm:$0xff] %vm39_vm0, %v1164_v47 }
 0xc9a PF:  { %p2339_p4 = scmp.le.s32.totalorder %s3477_s0, 4 }
 0xc9b   :  { %v2661_v48 = vpack.c.bf16 (!%p2339_p4), %v3146_v61, %v3141_v60  ;;  %v2665_v49 = vpack.c.bf16 (!%p2339_p4), %v3156_v63, %v3151_v62  ;;  %v1173_v50 = vld [vmem:[#allocation2] sm:$0xff] (!%p2339_p4)  ;;  %v1272_v51 = vld [vmem:[#allocation3] sm:$0xff] (!%p2339_p4)  ;;  %s2933_s21 = smov (!%p2339_p4), 32   ;;  %v1273_v52 = vld [vmem:[#allocation3 + $0x8] sm:$0xff] (!%p2339_p4)  ;;  %v2934_v56 = vmov (!%p2339_p4), 0   ;;  %vm1336_vm4 = vcmp.eq.s32.totalorder (!%p2339_p4), %v3048_v11, 4 }
 0xc9c   :  { %1172 = sbr.rel (%p2339_p4) target bundleno = 3949 (0xf6d), region = 61  ;;  %2540 = vmatprep.mubr.msk.f32.mxu0 (!%p2339_p4), %vm39_vm0, %v1173_v50  ;;  %1276 = vrot.lane.b32.xlu1 (!%p2339_p4), %v1272_v51, %s2933_s21  ;;  %v1174_v10 = vld [vmem:[#allocation2 + $0x8] sm:$0xff] (!%p2339_p4)  ;;  %v1340_v22 = vsel (!%p2339_p4), %vm1336_vm4, 1, %v2934_v56  ;;  %vm1337_vm5 = vcmp.eq.s32.totalorder (!%p2339_p4), %v3050_v12, 4  ;;  %v1338_v34 = vld [vmem:[#allocation4] sm:$0xff] (!%p2339_p4)  ;;  %s2935_s22 = smov (!%p2339_p4), 64  }
 0xc9d   :  { %2662 = vmatprep.subr.bf16.mxu0 (!%p2339_p4), %v2661_v48  ;;  %2844 = vset.pattern.permute.xlu1 (!%p2339_p4), %v2934_v56  ;;  %v1341_v24 = vsel (!%p2339_p4), %vm1337_vm5, 1, %v2934_v56  ;;  %s2936_s4 = smov (!%p2339_p4), 96  }
 0xc9e   :  { %2664 = vmatpush3.bf16.msra.mxu0 (!%p2339_p4), %v2661_v48  ;;  %2843 = vset.pattern.permute.xlu0 (!%p2339_p4), %v2934_v56 }
 0xc9f   :  { %2666 = vmatprep.subr.bf16.mxu0 (!%p2339_p4), %v2665_v49 }
 0xca0   :  { %1278 = vrot.lane.b32.xlu1 (!%p2339_p4), %v1273_v52, %s2933_s21  ;;  %v1339_v36 = vld [vmem:[#allocation4 + $0x8] sm:$0xff] (!%p2339_p4) }
 0xca2   :  { %2668 = vmatpush3.bf16.msra.mxu0 (!%p2339_p4), %v2665_v49 }
 0xca5   :  { %2541 = vmatmul.mubr.msk.f32.vlgmr.msra.gmra.mrb[0].mxu0 %vm39_vm0, %v1174_v10 }
 0xd0e   :  { %v1277_v25 = vpop.permute.xlu1 %1276 }
 0xd12   :  { %v1279_v27 = vpop.permute.xlu1 %1278 }
 0xd78   :  { %v2542_v53 = vpop.f32.mrb[0].mxu0 }
 0xd79   :  { %v1247_v8 = vpop.f32.mrb[1].mxu0  ;;  %v1257_v55 = vadd.f32 %v2542_v53, %v3158_v2 }
 0xd7a   :  { %v1256_v54 = vadd.f32 %v1247_v8, %v3160_v3 }
 0xd7b   :  { %v2343_v14 = vmul.f32 -1.442695, %v1257_v55 }
 0xd7c   :  { %2845 = vtanh.f32 %v1256_v54  ;;  %v2342_v58 = vmul.f32 -1.442695, %v1256_v54 }
 0xd7d   :  { %2847 = vtanh.f32 %v1257_v55 }
 0xd7e   :  { %2849 = vpow2.f32 %v2342_v58 }
 0xd7f   :  { %2851 = vpow2.f32 %v2343_v14 }
 0xd86   :  { %v2846_v57 = vpop.eup %2845 }
 0xd87   :  { %1286 = vrot.lane.b32.xlu0 %v2846_v57, %s2933_s21  ;;  %v2848_v16 = vpop.eup %2847 }
 0xd88   :  { %v2850_v59 = vpop.eup %2849 }
 0xd89   :  { %v1264_v0 = vadd.f32 1.0, %v2850_v59  ;;  %v2852_v3 = vpop.eup %2851 }
 0xd8a   :  { %v1265_v1 = vadd.f32 1.0, %v2852_v3 }
 0xd8b   :  { %1288 = vrot.lane.b32.xlu0 %v2848_v16, %s2933_s21  ;;  %2853 = vrcp.f32 %v1264_v0 }
 0xd8c   :  { %2855 = vrcp.f32 %v1265_v1 }
 0xd95   :  { %v2854_v2 = vpop.eup %2853 }
 0xd96   :  { %v2856_v20 = vpop.eup %2855  ;;  %v1282_v26 = vmul.f32 %v2854_v2, %v1277_v25 }
 0xd97   :  { %v1283_v30 = vmul.f32 %v2856_v20, %v1279_v27 }
 0xdf9   :  { %v1287_v18 = vpop.permute.xlu0 %1286 }
 0xdfa   :  { %v1292_v19 = vmul.f32 %v2854_v2, %v1287_v18 }
 0xdfc   :  { %1296 = vrot.lane.b32.xlu0 %v1292_v19, %s2933_s21 }
 0xdfd   :  { %v1289_v21 = vpop.permute.xlu0 %1288 }
 0xdfe   :  { %v1293_v23 = vmul.f32 %v2856_v20, %v1289_v21 }
 0xe00   :  { %1298 = vrot.lane.b32.xlu1 %v1293_v23, %s2933_s21  ;;  %1343 = vperm.xlu0 %2843, %v1340_v22  }
 0xe04   :  { %1346 = vperm.xlu1 %2844, %v1341_v24  }
 0xe6e   :  { %v1297_v28 = vpop.permute.xlu0 %1296 }
 0xe6f   :  { %v1302_v29 = vadd.f32 %v1297_v28, %v1282_v26 }
 0xe71   :  { %2857 = vtanh.f32 %v1302_v29 }
 0xe72   :  { %v1299_v31 = vpop.permute.xlu1 %1298 }
 0xe73   :  { %v1303_v32 = vadd.f32 %v1299_v31, %v1283_v30 }
 0xe75   :  { %2859 = vtanh.f32 %v1303_v32 }
 0xe7b   :  { %v2858_v33 = vpop.eup %2857 }
 0xe7c   :  { %1308 = vrot.lane.b32.xlu1 %v2858_v33, %s2933_s21 }
 0xe7f   :  { %v2860_v35 = vpop.eup %2859  ;;  %v1344_v38 = vpop.permute.xlu0 %1343 }
 0xe80   :  { %1310 = vrot.lane.b32.xlu0 %v2860_v35, %s2933_s21  ;;  %1352 = vrot.lane.b32.xlu1 %v1338_v34, %s2935_s22  ;;  %vm1348_vm6 = vcmp.eq.s32.totalorder %v1344_v38, 1 }
 0xe83   :  { %v1347_v37 = vpop.permute.xlu1 %1346 }
 0xe84   :  { %1354 = vrot.lane.b32.xlu0 %v1339_v36, %s2935_s22  ;;  %1318 = vrot.lane.b32.xlu1 %v1302_v29, %s2936_s4  ;;  %vm1349_vm7 = vcmp.eq.s32.totalorder %v1347_v37, 1 }
 0xe88   :  { %1320 = vrot.lane.b32.xlu0 %v1303_v32, %s2936_s4 }
 0xeee   :  { %v1309_v39 = vpop.permute.xlu1 %1308 }
 0xeef   :  { %v1314_v40 = vmul.f32 %v2854_v2, %v1309_v39 }
 0xef1   :  { %1328 = vrot.lane.b32.xlu1 %v1314_v40, %s2935_s22 }
 0xef2   :  { %v1311_v41 = vpop.permute.xlu0 %1310  ;;  %v1353_v42 = vpop.permute.xlu1 %1352 }
 0xef3   :  { %v1315_v43 = vmul.f32 %v2856_v20, %v1311_v41  ;;  %v1358_v44 = vsel %vm1348_vm6, %v1314_v40, %v1353_v42 }
 0xef5   :  { %1330 = vrot.lane.b32.xlu0 %v1315_v43, %s2935_s22  ;;  %1362 = vrot.lane.b32.xlu1 %v1358_v44, %s2935_s22 }
 0xef6   :  { %v1355_v45 = vpop.permute.xlu0 %1354  ;;  %v1319_v6 = vpop.permute.xlu1 %1318 }
 0xef7   :  { %1324 = vst.msk [vmem:[#allocation3] sm:$0xff] %vm39_vm0, %v1319_v6  ;;  %v1359_v46 = vsel %vm1349_vm7, %v1315_v43, %v1355_v45 }
 0xef9   :  { %1364 = vrot.lane.b32.xlu0 %v1359_v46, %s2935_s22 }
 0xefa   :  { %v1321_v4 = vpop.permute.xlu0 %1320 }
 0xefb   :  { %1325 = vst.msk [vmem:[#allocation3 + $0x8] sm:$0xff] %vm39_vm0, %v1321_v4 }
 0xf63   :  { %v1329_v47 = vpop.permute.xlu1 %1328 }
 0xf64   :  { %1334 = vst.msk [vmem:[#allocation2] sm:$0xff] %vm39_vm0, %v1329_v47 }
 0xf67   :  { %v1331_v48 = vpop.permute.xlu0 %1330  ;;  %v1363_v49 = vpop.permute.xlu1 %1362 }
 0xf68   :  { %1335 = vst.msk [vmem:[#allocation2 + $0x8] sm:$0xff] %vm39_vm0, %v1331_v48  ;;  %1368 = vst.msk [vmem:[#allocation4] sm:$0xff] %vm39_vm0, %v1363_v49 }
 0xf6b   :  { %v1365_v50 = vpop.permute.xlu0 %1364 }
 0xf6c   :  { %1369 = vst.msk [vmem:[#allocation4 + $0x8] sm:$0xff] %vm39_vm0, %v1365_v50 }
 0xf6d PF:  { %p2344_p5 = scmp.le.s32.totalorder %s3477_s0, 5 }
 0xf6e   :  { %v2669_v51 = vpack.c.bf16 (!%p2344_p5), %v3146_v61, %v3141_v60  ;;  %v2673_v52 = vpack.c.bf16 (!%p2344_p5), %v3156_v63, %v3151_v62  ;;  %v1374_v10 = vld [vmem:[#allocation2] sm:$0xff] (!%p2344_p5)  ;;  %v1473_v53 = vld [vmem:[#allocation3] sm:$0xff] (!%p2344_p5)  ;;  %s2937_s23 = smov (!%p2344_p5), 32   ;;  %v1474_v8 = vld [vmem:[#allocation3 + $0x8] sm:$0xff] (!%p2344_p5)  ;;  %v2938_v58 = vmov (!%p2344_p5), 0   ;;  %vm1537_vm8 = vcmp.eq.s32.totalorder (!%p2344_p5), %v3048_v11, 5 }
 0xf6f   :  { %1373 = sbr.rel (%p2344_p5) target bundleno = 4672 (0x1240), region = 65  ;;  %2551 = vmatprep.mubr.msk.f32.mxu0 (!%p2344_p5), %vm39_vm0, %v1374_v10  ;;  %1477 = vrot.lane.b32.xlu1 (!%p2344_p5), %v1473_v53, %s2937_s23  ;;  %v1375_v54 = vld [vmem:[#allocation2 + $0x8] sm:$0xff] (!%p2344_p5)  ;;  %v1541_v23 = vsel (!%p2344_p5), %vm1537_vm8, 1, %v2938_v58  ;;  %vm1538_vm9 = vcmp.eq.s32.totalorder (!%p2344_p5), %v3050_v12, 5  ;;  %v1539_v35 = vld [vmem:[#allocation4] sm:$0xff] (!%p2344_p5)  ;;  %s2939_s24 = smov (!%p2344_p5), 64  }
 0xf70   :  { %2670 = vmatprep.subr.bf16.mxu0 (!%p2344_p5), %v2669_v51  ;;  %2862 = vset.pattern.permute.xlu1 (!%p2344_p5), %v2938_v58  ;;  %v1542_v25 = vsel (!%p2344_p5), %vm1538_vm9, 1, %v2938_v58  ;;  %s2940_s25 = smov (!%p2344_p5), 96  }
 0xf71   :  { %2672 = vmatpush3.bf16.msra.mxu0 (!%p2344_p5), %v2669_v51  ;;  %2861 = vset.pattern.permute.xlu0 (!%p2344_p5), %v2938_v58 }
 0xf72   :  { %2674 = vmatprep.subr.bf16.mxu0 (!%p2344_p5), %v2673_v52 }
 0xf73   :  { %1479 = vrot.lane.b32.xlu1 (!%p2344_p5), %v1474_v8, %s2937_s23  ;;  %v1540_v37 = vld [vmem:[#allocation4 + $0x8] sm:$0xff] (!%p2344_p5) }
 0xf75   :  { %2676 = vmatpush3.bf16.msra.mxu0 (!%p2344_p5), %v2673_v52 }
 0xf78   :  { %2552 = vmatmul.mubr.msk.f32.vlgmr.msra.gmra.mrb[0].mxu0 %vm39_vm0, %v1375_v54 }
 0xfe1   :  { %v1478_v26 = vpop.permute.xlu1 %1477 }
 0xfe5   :  { %v1480_v28 = vpop.permute.xlu1 %1479 }
0x104b   :  { %v2553_v55 = vpop.f32.mrb[0].mxu0 }
0x104c   :  { %v1448_v56 = vpop.f32.mrb[1].mxu0  ;;  %v1458_v16 = vadd.f32 %v2553_v55, %v3164_v5 }
0x104d   :  { %v1457_v57 = vadd.f32 %v1448_v56, %v3168_v7 }
0x104e   :  { %v2348_v3 = vmul.f32 -1.442695, %v1458_v16 }
0x104f   :  { %2863 = vtanh.f32 %v1457_v57  ;;  %v2347_v0 = vmul.f32 -1.442695, %v1457_v57 }
0x1050   :  { %2865 = vtanh.f32 %v1458_v16 }
0x1051   :  { %2867 = vpow2.f32 %v2347_v0 }
0x1052   :  { %2869 = vpow2.f32 %v2348_v3 }
0x1059   :  { %v2864_v14 = vpop.eup %2863 }
0x105a   :  { %1487 = vrot.lane.b32.xlu0 %v2864_v14, %s2937_s23  ;;  %v2866_v59 = vpop.eup %2865 }
0x105b   :  { %v2868_v1 = vpop.eup %2867 }
0x105c   :  { %v1465_v2 = vadd.f32 1.0, %v2868_v1  ;;  %v2870_v7 = vpop.eup %2869 }
0x105d   :  { %v1466_v18 = vadd.f32 1.0, %v2870_v7 }
0x105e   :  { %1489 = vrot.lane.b32.xlu0 %v2866_v59, %s2937_s23  ;;  %2871 = vrcp.f32 %v1465_v2 }
0x105f   :  { %2873 = vrcp.f32 %v1466_v18 }
0x1068   :  { %v2872_v5 = vpop.eup %2871 }
0x1069   :  { %v2874_v21 = vpop.eup %2873  ;;  %v1483_v27 = vmul.f32 %v2872_v5, %v1478_v26 }
0x106a   :  { %v1484_v31 = vmul.f32 %v2874_v21, %v1480_v28 }
0x10cc   :  { %v1488_v19 = vpop.permute.xlu0 %1487 }
0x10cd   :  { %v1493_v20 = vmul.f32 %v2872_v5, %v1488_v19 }
0x10cf   :  { %1497 = vrot.lane.b32.xlu0 %v1493_v20, %s2937_s23 }
0x10d0   :  { %v1490_v22 = vpop.permute.xlu0 %1489 }
0x10d1   :  { %v1494_v24 = vmul.f32 %v2874_v21, %v1490_v22 }
0x10d3   :  { %1499 = vrot.lane.b32.xlu1 %v1494_v24, %s2937_s23  ;;  %1544 = vperm.xlu0 %2861, %v1541_v23  }
0x10d7   :  { %1547 = vperm.xlu1 %2862, %v1542_v25  }
0x1141   :  { %v1498_v29 = vpop.permute.xlu0 %1497 }
0x1142   :  { %v1503_v30 = vadd.f32 %v1498_v29, %v1483_v27 }
0x1144   :  { %2875 = vtanh.f32 %v1503_v30 }
0x1145   :  { %v1500_v32 = vpop.permute.xlu1 %1499 }
0x1146   :  { %v1504_v33 = vadd.f32 %v1500_v32, %v1484_v31 }
0x1148   :  { %2877 = vtanh.f32 %v1504_v33 }
0x114e   :  { %v2876_v34 = vpop.eup %2875 }
0x114f   :  { %1509 = vrot.lane.b32.xlu1 %v2876_v34, %s2937_s23 }
0x1152   :  { %v2878_v36 = vpop.eup %2877  ;;  %v1545_v39 = vpop.permute.xlu0 %1544 }
0x1153   :  { %1511 = vrot.lane.b32.xlu0 %v2878_v36, %s2937_s23  ;;  %1553 = vrot.lane.b32.xlu1 %v1539_v35, %s2939_s24  ;;  %vm1549_vm10 = vcmp.eq.s32.totalorder %v1545_v39, 1 }
0x1156   :  { %v1548_v38 = vpop.permute.xlu1 %1547 }
0x1157   :  { %1555 = vrot.lane.b32.xlu0 %v1540_v37, %s2939_s24  ;;  %1519 = vrot.lane.b32.xlu1 %v1503_v30, %s2940_s25  ;;  %vm1550_vm11 = vcmp.eq.s32.totalorder %v1548_v38, 1 }
0x115b   :  { %1521 = vrot.lane.b32.xlu0 %v1504_v33, %s2940_s25 }
0x11c1   :  { %v1510_v40 = vpop.permute.xlu1 %1509 }
0x11c2   :  { %v1515_v41 = vmul.f32 %v2872_v5, %v1510_v40 }
0x11c4   :  { %1529 = vrot.lane.b32.xlu1 %v1515_v41, %s2939_s24 }
0x11c5   :  { %v1512_v42 = vpop.permute.xlu0 %1511  ;;  %v1554_v43 = vpop.permute.xlu1 %1553 }
0x11c6   :  { %v1516_v44 = vmul.f32 %v2874_v21, %v1512_v42  ;;  %v1559_v45 = vsel %vm1549_vm10, %v1515_v41, %v1554_v43 }
0x11c8   :  { %1531 = vrot.lane.b32.xlu0 %v1516_v44, %s2939_s24  ;;  %1563 = vrot.lane.b32.xlu1 %v1559_v45, %s2939_s24 }
0x11c9   :  { %v1556_v6 = vpop.permute.xlu0 %1555  ;;  %v1520_v46 = vpop.permute.xlu1 %1519 }
0x11ca   :  { %1525 = vst.msk [vmem:[#allocation3] sm:$0xff] %vm39_vm0, %v1520_v46  ;;  %v1560_v4 = vsel %vm1550_vm11, %v1516_v44, %v1556_v6 }
0x11cc   :  { %1565 = vrot.lane.b32.xlu0 %v1560_v4, %s2939_s24 }
0x11cd   :  { %v1522_v47 = vpop.permute.xlu0 %1521 }
0x11ce   :  { %1526 = vst.msk [vmem:[#allocation3 + $0x8] sm:$0xff] %vm39_vm0, %v1522_v47 }
0x1236   :  { %v1530_v48 = vpop.permute.xlu1 %1529 }
0x1237   :  { %1535 = vst.msk [vmem:[#allocation2] sm:$0xff] %vm39_vm0, %v1530_v48 }
0x123a   :  { %v1532_v49 = vpop.permute.xlu0 %1531  ;;  %v1564_v50 = vpop.permute.xlu1 %1563 }
0x123b   :  { %1536 = vst.msk [vmem:[#allocation2 + $0x8] sm:$0xff] %vm39_vm0, %v1532_v49  ;;  %1569 = vst.msk [vmem:[#allocation4] sm:$0xff] %vm39_vm0, %v1564_v50 }
0x123e   :  { %v1566_v51 = vpop.permute.xlu0 %1565 }
0x123f   :  { %1570 = vst.msk [vmem:[#allocation4 + $0x8] sm:$0xff] %vm39_vm0, %v1566_v51 }
0x1240 PF:  { %p2349_p6 = scmp.le.s32.totalorder %s3477_s0, 6 }
0x1241   :  { %v2677_v52 = vpack.c.bf16 (!%p2349_p6), %v3146_v61, %v3141_v60  ;;  %v2681_v10 = vpack.c.bf16 (!%p2349_p6), %v3156_v63, %v3151_v62  ;;  %v1575_v53 = vld [vmem:[#allocation2] sm:$0xff] (!%p2349_p6)  ;;  %v1674_v8 = vld [vmem:[#allocation3] sm:$0xff] (!%p2349_p6)  ;;  %s2941_s28 = smov (!%p2349_p6), 32   ;;  %v1675_v54 = vld [vmem:[#allocation3 + $0x8] sm:$0xff] (!%p2349_p6)  ;;  %v2942_v14 = vmov (!%p2349_p6), 0   ;;  %vm1738_vm12 = vcmp.eq.s32.totalorder (!%p2349_p6), %v3048_v11, 6 }
0x1242   :  { %1574 = sbr.rel (%p2349_p6) target bundleno = 5395 (0x1513), region = 69  ;;  %2562 = vmatprep.mubr.msk.f32.mxu0 (!%p2349_p6), %vm39_vm0, %v1575_v53  ;;  %1678 = vrot.lane.b32.xlu1 (!%p2349_p6), %v1674_v8, %s2941_s28  ;;  %v1576_v55 = vld [vmem:[#allocation2 + $0x8] sm:$0xff] (!%p2349_p6)  ;;  %v1742_v22 = vsel (!%p2349_p6), %vm1738_vm12, 1, %v2942_v14  ;;  %vm1739_vm13 = vcmp.eq.s32.totalorder (!%p2349_p6), %v3050_v12, 6  ;;  %v1740_v34 = vld [vmem:[#allocation4] sm:$0xff] (!%p2349_p6)  ;;  %s2943_s29 = smov (!%p2349_p6), 64  }
0x1243   :  { %2678 = vmatprep.subr.bf16.mxu0 (!%p2349_p6), %v2677_v52  ;;  %2880 = vset.pattern.permute.xlu1 (!%p2349_p6), %v2942_v14  ;;  %v1743_v24 = vsel (!%p2349_p6), %vm1739_vm13, 1, %v2942_v14  ;;  %s2944_s30 = smov (!%p2349_p6), 96  }
0x1244   :  { %2680 = vmatpush3.bf16.msra.mxu0 (!%p2349_p6), %v2677_v52  ;;  %2879 = vset.pattern.permute.xlu0 (!%p2349_p6), %v2942_v14 }
0x1245   :  { %2682 = vmatprep.subr.bf16.mxu0 (!%p2349_p6), %v2681_v10 }
0x1246   :  { %1680 = vrot.lane.b32.xlu1 (!%p2349_p6), %v1675_v54, %s2941_s28  ;;  %v1741_v36 = vld [vmem:[#allocation4 + $0x8] sm:$0xff] (!%p2349_p6) }
0x1248   :  { %2684 = vmatpush3.bf16.msra.mxu0 (!%p2349_p6), %v2681_v10 }
0x124b   :  { %2563 = vmatmul.mubr.msk.f32.vlgmr.msra.gmra.mrb[0].mxu0 %vm39_vm0, %v1576_v55 }
0x12b4   :  { %v1679_v25 = vpop.permute.xlu1 %1678 }
0x12b8   :  { %v1681_v27 = vpop.permute.xlu1 %1680 }
0x131e   :  { %v2564_v56 = vpop.f32.mrb[0].mxu0 }
0x131f   :  { %v1649_v57 = vpop.f32.mrb[1].mxu0  ;;  %v1659_v58 = vadd.f32 %v2564_v56, %v3172_v9 }
0x1320   :  { %v1658_v16 = vadd.f32 %v1649_v57, %v3176_v13 }
0x1321   :  { %v2353_v1 = vmul.f32 -1.442695, %v1659_v58 }
0x1322   :  { %2881 = vtanh.f32 %v1658_v16  ;;  %v2352_v3 = vmul.f32 -1.442695, %v1658_v16 }
0x1323   :  { %2883 = vtanh.f32 %v1659_v58 }
0x1324   :  { %2885 = vpow2.f32 %v2352_v3 }
0x1325   :  { %2887 = vpow2.f32 %v2353_v1 }
0x132c   :  { %v2882_v59 = vpop.eup %2881 }
0x132d   :  { %1688 = vrot.lane.b32.xlu0 %v2882_v59, %s2941_s28  ;;  %v2884_v0 = vpop.eup %2883 }
0x132e   :  { %v2886_v2 = vpop.eup %2885 }
0x132f   :  { %v1666_v7 = vadd.f32 1.0, %v2886_v2  ;;  %v2888_v13 = vpop.eup %2887 }
0x1330   :  { %v1667_v18 = vadd.f32 1.0, %v2888_v13 }
0x1331   :  { %1690 = vrot.lane.b32.xlu0 %v2884_v0, %s2941_s28  ;;  %2889 = vrcp.f32 %v1666_v7 }
0x1332   :  { %2891 = vrcp.f32 %v1667_v18 }
0x133b   :  { %v2890_v9 = vpop.eup %2889 }
0x133c   :  { %v2892_v20 = vpop.eup %2891  ;;  %v1684_v26 = vmul.f32 %v2890_v9, %v1679_v25 }
0x133d   :  { %v1685_v30 = vmul.f32 %v2892_v20, %v1681_v27 }
0x139f   :  { %v1689_v5 = vpop.permute.xlu0 %1688 }
0x13a0   :  { %v1694_v19 = vmul.f32 %v2890_v9, %v1689_v5 }
0x13a2   :  { %1698 = vrot.lane.b32.xlu0 %v1694_v19, %s2941_s28 }
0x13a3   :  { %v1691_v21 = vpop.permute.xlu0 %1690 }
0x13a4   :  { %v1695_v23 = vmul.f32 %v2892_v20, %v1691_v21 }
0x13a6   :  { %1700 = vrot.lane.b32.xlu1 %v1695_v23, %s2941_s28  ;;  %1745 = vperm.xlu0 %2879, %v1742_v22  }
0x13aa   :  { %1748 = vperm.xlu1 %2880, %v1743_v24  }
0x1414   :  { %v1699_v28 = vpop.permute.xlu0 %1698 }
0x1415   :  { %v1704_v29 = vadd.f32 %v1699_v28, %v1684_v26 }
0x1417   :  { %2893 = vtanh.f32 %v1704_v29 }
0x1418   :  { %v1701_v31 = vpop.permute.xlu1 %1700 }
0x1419   :  { %v1705_v32 = vadd.f32 %v1701_v31, %v1685_v30 }
0x141b   :  { %2895 = vtanh.f32 %v1705_v32 }
0x1421   :  { %v2894_v33 = vpop.eup %2893 }
0x1422   :  { %1710 = vrot.lane.b32.xlu1 %v2894_v33, %s2941_s28 }
0x1425   :  { %v2896_v35 = vpop.eup %2895  ;;  %v1746_v38 = vpop.permute.xlu0 %1745 }
0x1426   :  { %1712 = vrot.lane.b32.xlu0 %v2896_v35, %s2941_s28  ;;  %1754 = vrot.lane.b32.xlu1 %v1740_v34, %s2943_s29  ;;  %vm1750_vm14 = vcmp.eq.s32.totalorder %v1746_v38, 1 }
0x1429   :  { %v1749_v37 = vpop.permute.xlu1 %1748 }
0x142a   :  { %1756 = vrot.lane.b32.xlu0 %v1741_v36, %s2943_s29  ;;  %1720 = vrot.lane.b32.xlu1 %v1704_v29, %s2944_s30  ;;  %vm1751_vm15 = vcmp.eq.s32.totalorder %v1749_v37, 1 }
0x142e   :  { %1722 = vrot.lane.b32.xlu0 %v1705_v32, %s2944_s30 }
0x1494   :  { %v1711_v39 = vpop.permute.xlu1 %1710 }
0x1495   :  { %v1716_v40 = vmul.f32 %v2890_v9, %v1711_v39 }
0x1497   :  { %1730 = vrot.lane.b32.xlu1 %v1716_v40, %s2943_s29 }
0x1498   :  { %v1713_v41 = vpop.permute.xlu0 %1712  ;;  %v1755_v42 = vpop.permute.xlu1 %1754 }
0x1499   :  { %v1717_v43 = vmul.f32 %v2892_v20, %v1713_v41  ;;  %v1760_v44 = vsel %vm1750_vm14, %v1716_v40, %v1755_v42 }
0x149b   :  { %1732 = vrot.lane.b32.xlu0 %v1717_v43, %s2943_s29  ;;  %1764 = vrot.lane.b32.xlu1 %v1760_v44, %s2943_s29 }
0x149c   :  { %v1757_v45 = vpop.permute.xlu0 %1756  ;;  %v1721_v6 = vpop.permute.xlu1 %1720 }
0x149d   :  { %1726 = vst.msk [vmem:[#allocation3] sm:$0xff] %vm39_vm0, %v1721_v6  ;;  %v1761_v46 = vsel %vm1751_vm15, %v1717_v43, %v1757_v45 }
0x149f   :  { %1766 = vrot.lane.b32.xlu0 %v1761_v46, %s2943_s29 }
0x14a0   :  { %v1723_v4 = vpop.permute.xlu0 %1722 }
0x14a1   :  { %1727 = vst.msk [vmem:[#allocation3 + $0x8] sm:$0xff] %vm39_vm0, %v1723_v4 }
0x1509   :  { %v1731_v47 = vpop.permute.xlu1 %1730 }
0x150a   :  { %1736 = vst.msk [vmem:[#allocation2] sm:$0xff] %vm39_vm0, %v1731_v47 }
0x150d   :  { %v1733_v48 = vpop.permute.xlu0 %1732  ;;  %v1765_v49 = vpop.permute.xlu1 %1764 }
0x150e   :  { %1737 = vst.msk [vmem:[#allocation2 + $0x8] sm:$0xff] %vm39_vm0, %v1733_v48  ;;  %1770 = vst.msk [vmem:[#allocation4] sm:$0xff] %vm39_vm0, %v1765_v49 }
0x1511   :  { %v1767_v50 = vpop.permute.xlu0 %1766 }
0x1512   :  { %1771 = vst.msk [vmem:[#allocation4 + $0x8] sm:$0xff] %vm39_vm0, %v1767_v50 }
0x1513 PF:  { %p2354_p7 = scmp.le.s32.totalorder %s3477_s0, 7 }
0x1514   :  { %v2685_v51 = vpack.c.bf16 (!%p2354_p7), %v3146_v61, %v3141_v60  ;;  %v2689_v52 = vpack.c.bf16 (!%p2354_p7), %v3156_v63, %v3151_v62  ;;  %v1776_v10 = vld [vmem:[#allocation2] sm:$0xff] (!%p2354_p7)  ;;  %v1875_v53 = vld [vmem:[#allocation3] sm:$0xff] (!%p2354_p7)  ;;  %s2945_s14 = smov (!%p2354_p7), 32   ;;  %v1876_v8 = vld [vmem:[#allocation3 + $0x8] sm:$0xff] (!%p2354_p7)  ;;  %v2946_v55 = vmov (!%p2354_p7), 0   ;;  %vm1939_vm2 = vcmp.eq.s32.totalorder (!%p2354_p7), %v3048_v11, 7 }
0x1515   :  { %1775 = sbr.rel (%p2354_p7) target bundleno = 6118 (0x17e6), region = 73  ;;  %2573 = vmatprep.mubr.msk.f32.mxu0 (!%p2354_p7), %vm39_vm0, %v1776_v10  ;;  %1879 = vrot.lane.b32.xlu1 (!%p2354_p7), %v1875_v53, %s2945_s14  ;;  %v1777_v54 = vld [vmem:[#allocation2 + $0x8] sm:$0xff] (!%p2354_p7)  ;;  %v1943_v13 = vsel (!%p2354_p7), %vm1939_vm2, 1, %v2946_v55  ;;  %vm1940_vm3 = vcmp.eq.s32.totalorder (!%p2354_p7), %v3050_v12, 7  ;;  %v1941_v26 = vld [vmem:[#allocation4] sm:$0xff] (!%p2354_p7)  ;;  %s2947_s0 = smov (!%p2354_p7), 64  }
0x1516   :  { %2686 = vmatprep.subr.bf16.mxu0 (!%p2354_p7), %v2685_v51  ;;  %2898 = vset.pattern.permute.xlu1 (!%p2354_p7), %v2946_v55  ;;  %v1944_v9 = vsel (!%p2354_p7), %vm1940_vm3, 1, %v2946_v55  ;;  %s2948_s15 = smov (!%p2354_p7), 96  }
0x1517   :  { %2688 = vmatpush3.bf16.msra.mxu0 (!%p2354_p7), %v2685_v51  ;;  %2897 = vset.pattern.permute.xlu0 (!%p2354_p7), %v2946_v55 }
0x1518   :  { %2690 = vmatprep.subr.bf16.mxu0 (!%p2354_p7), %v2689_v52 }
0x1519   :  { %1881 = vrot.lane.b32.xlu1 (!%p2354_p7), %v1876_v8, %s2945_s14  ;;  %v1942_v27 = vld [vmem:[#allocation4 + $0x8] sm:$0xff] (!%p2354_p7) }
0x151b   :  { %2692 = vmatpush3.bf16.msra.mxu0 (!%p2354_p7), %v2689_v52 }
0x151e   :  { %2574 = vmatmul.mubr.msk.f32.vlgmr.msra.gmra.mrb[0].mxu0 %vm39_vm0, %v1777_v54 }
0x1587   :  { %v1880_v5 = vpop.permute.xlu1 %1879 }
0x158b   :  { %v1882_v20 = vpop.permute.xlu1 %1881 }
0x15f1   :  { %v2575_v60 = vpop.f32.mrb[0].mxu0 }
0x15f2   :  { %v1850_v61 = vpop.f32.mrb[1].mxu0  ;;  %v1860_v63 = vadd.f32 %v2575_v60, %v3180_v15 }
0x15f3   :  { %v1859_v62 = vadd.f32 %v1850_v61, %v3184_v17 }
0x15f4   :  { %v2358_v58 = vmul.f32 -1.442695, %v1860_v63 }
0x15f5   :  { %2899 = vtanh.f32 %v1859_v62  ;;  %v2357_v16 = vmul.f32 -1.442695, %v1859_v62 }
0x15f6   :  { %2901 = vtanh.f32 %v1860_v63 }
0x15f7   :  { %2903 = vpow2.f32 %v2357_v16 }
0x15f8   :  { %2905 = vpow2.f32 %v2358_v58 }
0x15ff   :  { %v2900_v56 = vpop.eup %2899 }
0x1600   :  { %1889 = vrot.lane.b32.xlu0 %v2900_v56, %s2945_s14  ;;  %v2902_v57 = vpop.eup %2901 }
0x1601   :  { %v2904_v14 = vpop.eup %2903 }
0x1602   :  { %v1867_v59 = vadd.f32 1.0, %v2904_v14  ;;  %v2906_v17 = vpop.eup %2905 }
0x1603   :  { %v1868_v0 = vadd.f32 1.0, %v2906_v17 }
0x1604   :  { %1891 = vrot.lane.b32.xlu0 %v2902_v57, %s2945_s14  ;;  %2907 = vrcp.f32 %v1867_v59 }
0x1605   :  { %2909 = vrcp.f32 %v1868_v0 }
0x160e   :  { %v2908_v15 = vpop.eup %2907 }
0x160f   :  { %v2910_v2 = vpop.eup %2909  ;;  %v1885_v19 = vmul.f32 %v2908_v15, %v1880_v5 }
0x1610   :  { %v1886_v23 = vmul.f32 %v2910_v2, %v1882_v20 }
0x1672   :  { %v1890_v3 = vpop.permute.xlu0 %1889 }
0x1673   :  { %v1895_v1 = vmul.f32 %v2908_v15, %v1890_v3 }
0x1675   :  { %1899 = vrot.lane.b32.xlu0 %v1895_v1, %s2945_s14 }
0x1676   :  { %v1892_v7 = vpop.permute.xlu0 %1891 }
0x1677   :  { %v1896_v18 = vmul.f32 %v2910_v2, %v1892_v7 }
0x1679   :  { %1901 = vrot.lane.b32.xlu1 %v1896_v18, %s2945_s14  ;;  %1946 = vperm.xlu0 %2897, %v1943_v13  }
0x167d   :  { %1949 = vperm.xlu1 %2898, %v1944_v9  }
0x16e7   :  { %v1900_v21 = vpop.permute.xlu0 %1899 }
0x16e8   :  { %v1905_v22 = vadd.f32 %v1900_v21, %v1885_v19 }
0x16ea   :  { %2911 = vtanh.f32 %v1905_v22 }
0x16eb   :  { %v1902_v11 = vpop.permute.xlu1 %1901 }
0x16ec   :  { %v1906_v24 = vadd.f32 %v1902_v11, %v1886_v23 }
0x16ee   :  { %2913 = vtanh.f32 %v1906_v24 }
0x16f4   :  { %v2912_v25 = vpop.eup %2911 }
0x16f5   :  { %1911 = vrot.lane.b32.xlu1 %v2912_v25, %s2945_s14 }
0x16f8   :  { %v2914_v12 = vpop.eup %2913  ;;  %v1947_v29 = vpop.permute.xlu0 %1946 }
0x16f9   :  { %1913 = vrot.lane.b32.xlu0 %v2914_v12, %s2945_s14  ;;  %1955 = vrot.lane.b32.xlu1 %v1941_v26, %s2947_s0  ;;  %vm1951_vm1 = vcmp.eq.s32.totalorder %v1947_v29, 1 }
0x16fc   :  { %v1950_v28 = vpop.permute.xlu1 %1949 }
0x16fd   :  { %1957 = vrot.lane.b32.xlu0 %v1942_v27, %s2947_s0  ;;  %1921 = vrot.lane.b32.xlu1 %v1905_v22, %s2948_s15  ;;  %vm1952_vm4 = vcmp.eq.s32.totalorder %v1950_v28, 1 }
0x1701   :  { %1923 = vrot.lane.b32.xlu0 %v1906_v24, %s2948_s15 }
0x1767   :  { %v1912_v30 = vpop.permute.xlu1 %1911 }
0x1768   :  { %v1917_v31 = vmul.f32 %v2908_v15, %v1912_v30 }
0x176a   :  { %1931 = vrot.lane.b32.xlu1 %v1917_v31, %s2947_s0 }
0x176b   :  { %v1914_v32 = vpop.permute.xlu0 %1913  ;;  %v1956_v33 = vpop.permute.xlu1 %1955 }
0x176c   :  { %v1918_v34 = vmul.f32 %v2910_v2, %v1914_v32  ;;  %v1961_v35 = vsel %vm1951_vm1, %v1917_v31, %v1956_v33 }
0x176e   :  { %1933 = vrot.lane.b32.xlu0 %v1918_v34, %s2947_s0  ;;  %1965 = vrot.lane.b32.xlu1 %v1961_v35, %s2947_s0 }
0x176f   :  { %v1958_v36 = vpop.permute.xlu0 %1957  ;;  %v1922_v37 = vpop.permute.xlu1 %1921 }
0x1770   :  { %1927 = vst.msk [vmem:[#allocation3] sm:$0xff] %vm39_vm0, %v1922_v37  ;;  %v1962_v38 = vsel %vm1952_vm4, %v1918_v34, %v1958_v36 }
0x1772   :  { %1967 = vrot.lane.b32.xlu0 %v1962_v38, %s2947_s0 }
0x1773   :  { %v1924_v39 = vpop.permute.xlu0 %1923 }
0x1774   :  { %1928 = vst.msk [vmem:[#allocation3 + $0x8] sm:$0xff] %vm39_vm0, %v1924_v39 }
0x17dc   :  { %v1932_v40 = vpop.permute.xlu1 %1931 }
0x17dd   :  { %1937 = vst.msk [vmem:[#allocation2] sm:$0xff] %vm39_vm0, %v1932_v40 }
0x17e0   :  { %v1934_v41 = vpop.permute.xlu0 %1933  ;;  %v1966_v42 = vpop.permute.xlu1 %1965 }
0x17e1   :  { %1938 = vst.msk [vmem:[#allocation2 + $0x8] sm:$0xff] %vm39_vm0, %v1934_v41  ;;  %1971 = vst.msk [vmem:[#allocation4] sm:$0xff] %vm39_vm0, %v1966_v42 }
0x17e4   :  { %v1968_v43 = vpop.permute.xlu0 %1967 }
0x17e5   :  { %1972 = vst.msk [vmem:[#allocation4 + $0x8] sm:$0xff] %vm39_vm0, %v1968_v43 }
0x17e6 PF:  { %v1981_v44 = vld [vmem:[%s3478_s5] sm:$0xff]  ;;  %v1982_v45 = vld [vmem:[%s3478_s5 + $0x8] sm:$0xff]  ;;  %v1983_v6 = vld [vmem:[%s3478_s5 + $0x10] sm:$0xff]  ;;  %vm2098_vm9 = vcmask 785408   ;;  %vm2278_vm12 = vcmask 7168  }
0x17e7   :  { %v2693_v46 = vpack.c.bf16 %v1982_v45, %v1981_v44  ;;  %v1984_v4 = vld [vmem:[%s3478_s5 + $0x18] sm:$0xff]  ;;  %v2079_v51 = vld [vmem:[%s3480_s7] sm:$0xff]  ;;  %v2080_v52 = vld [vmem:[%s3480_s7 + $0x8] sm:$0xff] }
0x17e8   :  { %v1973_v47 = vld [vmem:[#allocation4] sm:$0xff]  ;;  %v2697_v49 = vpack.c.bf16 %v1984_v4, %v1983_v6  ;;  %v2701_v10 = vpack.c.bf16 %v2080_v52, %v2079_v51  ;;  %v2081_v53 = vld [vmem:[%s3480_s7 + $0x10] sm:$0xff]  ;;  %v2082_v8 = vld [vmem:[%s3480_s7 + $0x18] sm:$0xff] }
0x17e9   :  { %vm1975_vm5 = vcmp.gt.f32.partialorder %v1973_v47, 0.0  ;;  %v1977_v50 = vmul.f32 0.01, %v1973_v47  ;;  %2694 = vmatprep.subr.bf16.mxu0 %v2693_v46  ;;  %v2705_v61 = vpack.c.bf16 %v2082_v8, %v2081_v53  ;;  %v2083_v62 = vld [vmem:[%s3480_s7 + $0x20] sm:$0xff]  ;;  %v2084_v63 = vld [vmem:[%s3480_s7 + $0x28] sm:$0xff]  ;;  %v2085_v57 = vld [vmem:[%s3480_s7 + $0x30] sm:$0xff] }
0x17ea   :  { %2696 = vmatpush3.bf16.msra.mxu0 %v2693_v46  ;;  %2702 = vmatprep.subr.bf16.mxu1 %v2701_v10  ;;  %v2709_v56 = vpack.c.bf16 %v2084_v63, %v2083_v62  ;;  %v2086_v16 = vld [vmem:[%s3480_s7 + $0x38] sm:$0xff]  ;;  %v2087_v14 = vld [vmem:[%s3480_s7 + $0x40] sm:$0xff]  ;;  %v2088_v59 = vld [vmem:[%s3480_s7 + $0x48] sm:$0xff] }
0x17eb   :  { %v1979_v54 = vsel %vm1975_vm5, %v1973_v47, %v1977_v50  ;;  %2698 = vmatprep.subr.bf16.mxu0 %v2697_v49  ;;  %2704 = vmatpush3.bf16.msra.mxu1 %v2701_v10  ;;  %v2713_v58 = vpack.c.bf16 %v2086_v16, %v2085_v57  ;;  %v2717_v17 = vpack.c.bf16 %v2088_v59, %v2087_v14  ;;  %v2089_v0 = vld [vmem:[%s3480_s7 + $0x50] sm:$0xff]  ;;  %v2090_v15 = vld [vmem:[%s3480_s7 + $0x58] sm:$0xff]  ;;  %v2359_v1 = vld [vmem:[%s3479_s6] ss:$0 sm:$0xff] }
0x17ec   :  { %v1974_v48 = vld [vmem:[#allocation4 + $0x8] sm:$0xff]  ;;  %2584 = vmatprep.mubr.msk.f32.mxu0 %vm39_vm0, %v1979_v54  ;;  %2706 = vmatprep.subr.bf16.mxu1 %v2705_v61  ;;  %v2721_v3 = vpack.c.bf16 %v2090_v15, %v2089_v0  ;;  %v2186_v21 = vld [vmem:[%s3482_s9] sm:$0xff]  ;;  %v2188_v11 = vld [vmem:[%s3482_s9 + $0x10] sm:$0xff] }
0x17ed   :  { %v1978_v60 = vmul.f32 0.01, %v1974_v48  ;;  %vm1976_vm6 = vcmp.gt.f32.partialorder %v1974_v48, 0.0  ;;  %v2187_v22 = vld [vmem:[%s3482_s9 + $0x8] sm:$0xff]  ;;  %v2189_v24 = vld [vmem:[%s3482_s9 + $0x18] sm:$0xff] }
0x17ee   :  { %2700 = vmatpush3.bf16.msra.mxu0 %v2697_v49  ;;  %v2725_v23 = vpack.c.bf16 %v2187_v22, %v2186_v21  ;;  %v2729_v25 = vpack.c.bf16 %v2189_v24, %v2188_v11  ;;  %v2362_v26 = vld [vmem:[%s3481_s8] ss:$0 sm:$0xff]  ;;  %v2365_v34 = vld [vmem:[#allocation7] ss:$0 sm:$0xff] }
0x17ef   :  { %v1980_v55 = vsel %vm1976_vm6, %v1974_v48, %v1978_v60  ;;  %2708 = vmatpush3.bf16.msra.mxu1 %v2705_v61 }
0x17f0   :  { %2710 = vmatprep.subr.bf16.mxu1 %v2709_v56  ;;  %2726 = vmatprep.subr.bf16.mxu0 %v2725_v23 }
0x17f1   :  { %2585 = vmatmul.mubr.msk.f32.vlgmr.msra.gmra.mrb[0].mxu0 %vm39_vm0, %v1980_v55 }
0x17f2   :  { %2728 = vmatpush3.bf16.msra.mxu0 %v2725_v23 }
0x17f3   :  { %2712 = vmatpush3.bf16.msra.mxu1 %v2709_v56  ;;  %2730 = vmatprep.subr.bf16.mxu0 %v2729_v25 }
0x17f4   :  { %2714 = vmatprep.subr.bf16.mxu1 %v2713_v58 }
0x17f6   :  { %2732 = vmatpush3.bf16.msra.mxu0 %v2729_v25 }
0x17f7   :  { %2716 = vmatpush3.bf16.msra.mxu1 %v2713_v58 }
0x17f8   :  { %2718 = vmatprep.subr.bf16.mxu1 %v2717_v17 }
0x17fb   :  { %2720 = vmatpush3.bf16.msra.mxu1 %v2717_v17 }
0x17fc   :  { %2722 = vmatprep.subr.bf16.mxu1 %v2721_v3 }
0x17ff   :  { %2724 = vmatpush3.bf16.msra.mxu1 %v2721_v3 }
0x18c4   :  { %v2586_v2 = vpop.f32.mrb[0].mxu0 }
0x18c5   :  { %v2070_v7 = vadd.f32 %v2586_v2, %v2359_v1  ;;  %v2064_v13 = vpop.f32.mrb[1].mxu0 }
0x18c6   :  { %v2065_v18 = vadd.f32 %v2359_v1, %v2064_v13 }
0x18c7   :  { %v2076_v9 = vmul.f32 0.01, %v2070_v7  ;;  %vm2074_vm7 = vcmp.gt.f32.partialorder %v2070_v7, 0.0 }
0x18c8   :  { %vm2073_vm8 = vcmp.gt.f32.partialorder %v2065_v18, 0.0  ;;  %v2075_v5 = vmul.f32 0.01, %v2065_v18 }
0x18c9   :  { %v2078_v20 = vsel %vm2074_vm7, %v2070_v7, %v2076_v9 }
0x18ca   :  { %v2077_v19 = vsel %vm2073_vm8, %v2065_v18, %v2075_v5 }
0x18cb   :  { %2611 = vmatprep.mubr.msk.f32.mxu1 %vm2098_vm9, %v2077_v19 }
0x18cc   :  { %2612 = vmatmul.mubr.msk.f32.vlgmr.msra.gmra.mrb[0].mxu1 %vm2098_vm9, %v2078_v20 }
0x199f   :  { %v2613_v12 = vpop.f32.mrb[0].mxu1 }
0x19a0   :  { %v2177_v27 = vadd.f32 %v2613_v12, %v2362_v26  ;;  %v2171_v28 = vpop.f32.mrb[1].mxu1 }
0x19a1   :  { %v2172_v29 = vadd.f32 %v2362_v26, %v2171_v28 }
0x19a2   :  { %v2183_v30 = vmul.f32 0.01, %v2177_v27  ;;  %vm2181_vm10 = vcmp.gt.f32.partialorder %v2177_v27, 0.0 }
0x19a3   :  { %v2182_v31 = vmul.f32 0.01, %v2172_v29  ;;  %vm2180_vm11 = vcmp.gt.f32.partialorder %v2172_v29, 0.0 }
0x19a4   :  { %v2185_v33 = vsel %vm2181_vm10, %v2177_v27, %v2183_v30 }
0x19a5   :  { %v2184_v32 = vsel %vm2180_vm11, %v2172_v29, %v2182_v31 }
0x19a6   :  { %2622 = vmatprep.mubr.msk.f32.mxu0 %vm39_vm0, %v2184_v32 }
0x19a7   :  { %2623 = vmatmul.mubr.msk.f32.vlgmr.msra.gmra.mrb[2].mxu0 %vm39_vm0, %v2185_v33 }
0x1a7a   :  { %v2624_v35 = vpop.f32.mrb[2].mxu0 }
0x1a7b   :  { %v2275_v36 = vadd.f32 %v2624_v35, %v2365_v34  ;;  %v2269_v37 = vpop.f32.mrb[3].mxu0 }
0x1a7c   :  { %v2270_v38 = vadd.f32 %v2365_v34, %v2269_v37 }
0x1a7d   :  { %2280 = vst.msk [vmem:[%s3484_s11 + $0x8] sm:$0xff] %vm2278_vm12, %v2275_v36 }
0x1a7e   :  { %2279 = vst.msk [vmem:[%s3484_s11] sm:$0xff] %vm2278_vm12, %v2270_v38 }

</bundles_post_ra>
